<compile_context>
chip_gen: v7x
topology: tpu7x:2x2x1
jax: 0.10.0
libtpu: 0.0.40
codegen_flags: <defaults>
</compile_context>

<pallas_src>
import jax
import jax.numpy as jnp
from jax.experimental import pallas as pl
from jax.experimental.pallas import tpu as pltpu

INPUT_SIZE = 784
OUTPUT_SIZE = 10
LAYER_SIZES = [INPUT_SIZE, 512, 256, 128, OUTPUT_SIZE]
# Lane-aligned (multiple-of-128) padded OUTPUT sizes per layer; only the last
# layer (10 -> 128) actually needs padding, zero-filled so it is inert.
OUT_PAD_SIZES = [512, 256, 128, 128]
PADDED_OUT = OUT_PAD_SIZES[-1]
MAX_BATCH_TILE = 512


def _round_up(x, m):
    return (x + m - 1) // m * m


def _choose_batch_tile(b):
    """Pick the per-grid-step batch tile.

    - Cap at MAX_BATCH_TILE (512 rows: fills the 256-wide v6e/v7x MXU in M and
      amortizes grid-step overhead; working set < 5 MiB).
    - Guarantee >= 2 grid steps whenever the batch is large enough, so v7x's
      second TensorCore is never idle (zero cost on v5e/v6e).
    - Keep large tiles multiples of 128 (matches v5e's 4x128x128 MXU).
    - Tiny batches: a single sublane-aligned (multiple-of-8) tile.
    """
    if b >= 2 * MAX_BATCH_TILE:
        return MAX_BATCH_TILE
    if b >= 256:
        return _round_up(pl.cdiv(b, 2), 128)
    return _round_up(max(b, 8), 8)


def _fused_bc_mlp_kernel(x_ref, w1_ref, b1_ref, w2_ref, b2_ref,
                         w3_ref, b3_ref, w4_ref, b4_ref, o_ref):
    """Whole 4-layer BinaryConnect MLP on one batch tile, fully VMEM-resident.

    x_ref: (TB, 784) bf16; w_k: (in_dim, out_pad) bf16 (+/-1, zero-padded cols);
    b_k: (1, out_pad) f32; o_ref: (TB, 128) bf16.
    Intermediates stay as kernel values (VMEM/vregs), never written to HBM.
    All matmuls run bf16 on the MXU with f32 accumulation; bias + ReLU in f32.
    """
    h = jnp.dot(x_ref[...], w1_ref[...], preferred_element_type=jnp.float32)
    h = jnp.maximum(h + b1_ref[...], 0.0)

    h = jnp.dot(h.astype(jnp.bfloat16), w2_ref[...],
                preferred_element_type=jnp.float32)
    h = jnp.maximum(h + b2_ref[...], 0.0)

    h = jnp.dot(h.astype(jnp.bfloat16), w3_ref[...],
                preferred_element_type=jnp.float32)
    h = jnp.maximum(h + b3_ref[...], 0.0)

    y = jnp.dot(h.astype(jnp.bfloat16), w4_ref[...],
                preferred_element_type=jnp.float32)
    o_ref[...] = (y + b4_ref[...]).astype(o_ref.dtype)


def fused_bc_mlp(x_pad, packed_params, tb):
    """Single pallas_call over batch tiles. x_pad: (B_pad, 784) bf16."""
    b_pad, in_dim = x_pad.shape
    assert in_dim == INPUT_SIZE
    assert b_pad % tb == 0
    nb = b_pad // tb

    in_specs = [pl.BlockSpec((tb, INPUT_SIZE), lambda i: (i, 0))]
    operands = [x_pad]
    for w_bin, bias in packed_params:
        # Full-array blocks: weights/biases are loaded once and stay in VMEM.
        in_specs.append(pl.BlockSpec(w_bin.shape, lambda i: (0, 0)))
        in_specs.append(pl.BlockSpec(bias.shape, lambda i: (0, 0)))
        operands += [w_bin, bias]

    return pl.pallas_call(
        _fused_bc_mlp_kernel,
        out_shape=jax.ShapeDtypeStruct((b_pad, PADDED_OUT), jnp.bfloat16),
        grid=(nb,),
        in_specs=in_specs,
        out_specs=pl.BlockSpec((tb, PADDED_OUT), lambda i: (i, 0)),
        compiler_params=pltpu.CompilerParams(
            dimension_semantics=("parallel",),
            vmem_limit_bytes=32 << 20,
        ),
    )(*operands)


def init_params(key):
    """Deterministic parameter init (PyTorch nn.Linear-style uniform bounds).

    Weights stored as (in_dim, out_dim) = transpose of PyTorch's (out, in);
    bias as (1, out_dim). float32 (the 'real-valued' BinaryConnect weights).
    """
    params = []
    for k, (in_dim, out_dim) in enumerate(zip(LAYER_SIZES[:-1], LAYER_SIZES[1:])):
        kw, kb, key = jax.random.split(jax.random.fold_in(key, k), 3)
        bound = 1.0 / jnp.sqrt(jnp.float32(in_dim))
        w = jax.random.uniform(kw, (in_dim, out_dim), jnp.float32, -bound, bound)
        b = jax.random.uniform(kb, (1, out_dim), jnp.float32, -bound, bound)
        params.append((w, b))
    return params


def binarize_and_pack_params(params):
    """Precompute binarize(W) = sign(W) (sign(0) -> +1), zero-pad output dims to
    lane-aligned widths, cast to bf16 (+/-1 exact). Done ONCE per weight update,
    not per forward, so the kernel never re-binarizes static weights."""
    packed = []
    for k, (w, b) in enumerate(params):
        in_dim, out_dim = w.shape
        out_pad = OUT_PAD_SIZES[k]
        w_bin = jnp.where(w >= 0, 1.0, -1.0).astype(jnp.bfloat16)
        bias = b.astype(jnp.float32)
        if out_pad != out_dim:
            w_bin = jnp.pad(w_bin, ((0, 0), (0, out_pad - out_dim)))
            bias = jnp.pad(bias, ((0, 0), (0, out_pad - out_dim)))
        packed.append((w_bin, bias))
    return packed


@jax.jit
def net_forward(x, packed_params):
    # x = x.view(-1, 28*28)
    x = x.reshape(-1, INPUT_SIZE)
    b = x.shape[0]
    tb = _choose_batch_tile(b)
    b_pad = _round_up(max(b, 8), tb)
    # Cast activations to bf16 for the MXU (f32 accumulation inside the kernel);
    # any required batch padding is a single fused pad, no zeros + .at[].set().
    x_bf16 = x.astype(jnp.bfloat16)
    if b_pad != b:
        x_bf16 = jnp.pad(x_bf16, ((0, b_pad - b), (0, 0)))
    out = fused_bc_mlp(x_bf16, packed_params, tb)
    # Slice the 10 real logits back out and return f32 (module returns f32).
    return out[:b, :OUTPUT_SIZE].astype(jnp.float32)


if __name__ == "__main__":
    key = jax.random.PRNGKey(0)
    pkey, xkey = jax.random.split(key)
    params = init_params(pkey)
    packed = binarize_and_pack_params(params)   # once per weight update

    # Small MNIST-like batch: (batch=2, channels=1, 28, 28) -> view(-1, 784).
    x = jax.random.normal(xkey, (2, 1, 28, 28), dtype=jnp.float32)

    out = net_forward(x, packed)
    jax.block_until_ready(out)
    assert out.shape == (2, 10), out.shape

    # Pure-JAX f32 reference of the module semantics.
    ref = x.reshape(-1, INPUT_SIZE)
    for k, (w, b) in enumerate(params):
        wb = jnp.where(w >= 0, 1.0, -1.0)
        ref = ref @ wb + b
        if k < len(params) - 1:
            ref = jnp.maximum(ref, 0.0)

    # bf16 activations on the MXU (f32 accumulation) + bf16 output give ~1e-3
    # relative error; compare with a relative tolerance accordingly.
    rel_err = jnp.max(jnp.abs(out - ref)) / (jnp.max(jnp.abs(ref)) + 1e-6)
    assert float(rel_err) < 2e-2, float(rel_err)

    print("KERNEL_OK")
</pallas_src>

<mosaic_0001>
module attributes {stable_mosaic.version = 11 : i64} {
  func.func @_fused_bc_mlp_kernel(%arg0: i32, %arg1: memref<8x784xbf16, #tpu.memory_space<vmem>>, %arg2: memref<784x512xbf16, #tpu.memory_space<vmem>>, %arg3: memref<1x512xf32, #tpu.memory_space<vmem>>, %arg4: memref<512x256xbf16, #tpu.memory_space<vmem>>, %arg5: memref<1x256xf32, #tpu.memory_space<vmem>>, %arg6: memref<256x128xbf16, #tpu.memory_space<vmem>>, %arg7: memref<1x128xf32, #tpu.memory_space<vmem>>, %arg8: memref<128x128xbf16, #tpu.memory_space<vmem>>, %arg9: memref<1x128xf32, #tpu.memory_space<vmem>>, %arg10: memref<8x128xbf16, #tpu.memory_space<vmem>>) attributes {dimension_semantics = [#tpu.dimension_semantics<parallel>], iteration_bounds = array<i64: 1>, scalar_prefetch = 0 : i64, scratch_operands = 0 : i64, tpu.core_type = #tpu.core_type<tc>, window_params = [{transform_indices = @transform_0, window_bounds = array<i64: 8, 784>}, {pipeline_mode = #tpu.pipeline_mode<synchronous>, transform_indices = @transform_1, window_bounds = array<i64: 784, 512>}, {pipeline_mode = #tpu.pipeline_mode<synchronous>, transform_indices = @transform_2, window_bounds = array<i64: 1, 512>}, {pipeline_mode = #tpu.pipeline_mode<synchronous>, transform_indices = @transform_3, window_bounds = array<i64: 512, 256>}, {pipeline_mode = #tpu.pipeline_mode<synchronous>, transform_indices = @transform_4, window_bounds = array<i64: 1, 256>}, {pipeline_mode = #tpu.pipeline_mode<synchronous>, transform_indices = @transform_5, window_bounds = array<i64: 256, 128>}, {pipeline_mode = #tpu.pipeline_mode<synchronous>, transform_indices = @transform_6, window_bounds = array<i64: 1, 128>}, {pipeline_mode = #tpu.pipeline_mode<synchronous>, transform_indices = @transform_7, window_bounds = array<i64: 128, 128>}, {pipeline_mode = #tpu.pipeline_mode<synchronous>, transform_indices = @transform_8, window_bounds = array<i64: 1, 128>}, {transform_indices = @transform_9, window_bounds = array<i64: 8, 128>}]} {
    %c0 = arith.constant 0 : index
    %c0_0 = arith.constant 0 : index
    %0 = vector.load %arg1[%c0, %c0_0] : memref<8x784xbf16, #tpu.memory_space<vmem>>, vector<8x784xbf16>
    %c0_1 = arith.constant 0 : index
    %c0_2 = arith.constant 0 : index
    %1 = vector.load %arg2[%c0_1, %c0_2] : memref<784x512xbf16, #tpu.memory_space<vmem>>, vector<784x512xbf16>
    %cst = arith.constant dense<0.000000e+00> : vector<8x512xf32>
    %2 = tpu.matmul %0, %1, %cst {dimension_numbers = #tpu.dot_dimension_numbers<[1], [0], [0], [1], [0, 0, 1, 1], [], []>} : vector<8x784xbf16>, vector<784x512xbf16>, vector<8x512xf32> -> vector<8x512xf32>
    %c0_3 = arith.constant 0 : index
    %c0_4 = arith.constant 0 : index
    %3 = vector.load %arg3[%c0_3, %c0_4] : memref<1x512xf32, #tpu.memory_space<vmem>>, vector<1x512xf32>
    %4 = vector.broadcast %3 : vector<1x512xf32> to vector<8x512xf32>
    %5 = arith.addf %2, %4 : vector<8x512xf32>
    %cst_5 = arith.constant 0.000000e+00 : f32
    %6 = vector.broadcast %cst_5 : f32 to vector<8x512xf32>
    %7 = arith.maximumf %5, %6 : vector<8x512xf32>
    %8 = arith.truncf %7 : vector<8x512xf32> to vector<8x512xbf16>
    %c0_6 = arith.constant 0 : index
    %c0_7 = arith.constant 0 : index
    %9 = vector.load %arg4[%c0_6, %c0_7] : memref<512x256xbf16, #tpu.memory_space<vmem>>, vector<512x256xbf16>
    %cst_8 = arith.constant dense<0.000000e+00> : vector<8x256xf32>
    %10 = tpu.matmul %8, %9, %cst_8 {dimension_numbers = #tpu.dot_dimension_numbers<[1], [0], [0], [1], [0, 0, 1, 1], [], []>} : vector<8x512xbf16>, vector<512x256xbf16>, vector<8x256xf32> -> vector<8x256xf32>
    %c0_9 = arith.constant 0 : index
    %c0_10 = arith.constant 0 : index
    %11 = vector.load %arg5[%c0_9, %c0_10] : memref<1x256xf32, #tpu.memory_space<vmem>>, vector<1x256xf32>
    %12 = vector.broadcast %11 : vector<1x256xf32> to vector<8x256xf32>
    %13 = arith.addf %10, %12 : vector<8x256xf32>
    %cst_11 = arith.constant 0.000000e+00 : f32
    %14 = vector.broadcast %cst_11 : f32 to vector<8x256xf32>
    %15 = arith.maximumf %13, %14 : vector<8x256xf32>
    %16 = arith.truncf %15 : vector<8x256xf32> to vector<8x256xbf16>
    %c0_12 = arith.constant 0 : index
    %c0_13 = arith.constant 0 : index
    %17 = vector.load %arg6[%c0_12, %c0_13] : memref<256x128xbf16, #tpu.memory_space<vmem>>, vector<256x128xbf16>
    %cst_14 = arith.constant dense<0.000000e+00> : vector<8x128xf32>
    %18 = tpu.matmul %16, %17, %cst_14 {dimension_numbers = #tpu.dot_dimension_numbers<[1], [0], [0], [1], [0, 0, 1, 1], [], []>} : vector<8x256xbf16>, vector<256x128xbf16>, vector<8x128xf32> -> vector<8x128xf32>
    %c0_15 = arith.constant 0 : index
    %c0_16 = arith.constant 0 : index
    %19 = vector.load %arg7[%c0_15, %c0_16] : memref<1x128xf32, #tpu.memory_space<vmem>>, vector<1x128xf32>
    %20 = vector.broadcast %19 : vector<1x128xf32> to vector<8x128xf32>
    %21 = arith.addf %18, %20 : vector<8x128xf32>
    %cst_17 = arith.constant 0.000000e+00 : f32
    %22 = vector.broadcast %cst_17 : f32 to vector<8x128xf32>
    %23 = arith.maximumf %21, %22 : vector<8x128xf32>
    %24 = arith.truncf %23 : vector<8x128xf32> to vector<8x128xbf16>
    %c0_18 = arith.constant 0 : index
    %c0_19 = arith.constant 0 : index
    %25 = vector.load %arg8[%c0_18, %c0_19] : memref<128x128xbf16, #tpu.memory_space<vmem>>, vector<128x128xbf16>
    %cst_20 = arith.constant dense<0.000000e+00> : vector<8x128xf32>
    %26 = tpu.matmul %24, %25, %cst_20 {dimension_numbers = #tpu.dot_dimension_numbers<[1], [0], [0], [1], [0, 0, 1, 1], [], []>} : vector<8x128xbf16>, vector<128x128xbf16>, vector<8x128xf32> -> vector<8x128xf32>
    %c0_21 = arith.constant 0 : index
    %c0_22 = arith.constant 0 : index
    %27 = vector.load %arg9[%c0_21, %c0_22] : memref<1x128xf32, #tpu.memory_space<vmem>>, vector<1x128xf32>
    %28 = vector.broadcast %27 : vector<1x128xf32> to vector<8x128xf32>
    %29 = arith.addf %26, %28 : vector<8x128xf32>
    %30 = arith.truncf %29 : vector<8x128xf32> to vector<8x128xbf16>
    %c0_23 = arith.constant 0 : index
    %c0_24 = arith.constant 0 : index
    %31 = vector.load %arg10[%c0_23, %c0_24] : memref<8x128xbf16, #tpu.memory_space<vmem>>, vector<8x128xbf16>
    tpu.vector_store %arg10[%c0_23, %c0_24], %30 {strides = array<i32>} : memref<8x128xbf16, #tpu.memory_space<vmem>>, vector<8x128xbf16>,
    return
  }
  func.func @transform_0(%arg0: i32) -> (i32, i32) {
    %c0_i32 = arith.constant 0 : i32
    %c0_i32_0 = arith.constant 0 : i32
    return %arg0, %c0_i32 : i32, i32
  }
  func.func @transform_1(%arg0: i32) -> (i32, i32) {
    %c0_i32 = arith.constant 0 : i32
    %c0_i32_0 = arith.constant 0 : i32
    %c0_i32_1 = arith.constant 0 : i32
    return %c0_i32, %c0_i32_0 : i32, i32
  }
  func.func @transform_2(%arg0: i32) -> (i32, i32) {
    %c0_i32 = arith.constant 0 : i32
    %c0_i32_0 = arith.constant 0 : i32
    %c0_i32_1 = arith.constant 0 : i32
    return %c0_i32, %c0_i32_0 : i32, i32
  }
  func.func @transform_3(%arg0: i32) -> (i32, i32) {
    %c0_i32 = arith.constant 0 : i32
    %c0_i32_0 = arith.constant 0 : i32
    %c0_i32_1 = arith.constant 0 : i32
    return %c0_i32, %c0_i32_0 : i32, i32
  }
  func.func @transform_4(%arg0: i32) -> (i32, i32) {
    %c0_i32 = arith.constant 0 : i32
    %c0_i32_0 = arith.constant 0 : i32
    %c0_i32_1 = arith.constant 0 : i32
    return %c0_i32, %c0_i32_0 : i32, i32
  }
  func.func @transform_5(%arg0: i32) -> (i32, i32) {
    %c0_i32 = arith.constant 0 : i32
    %c0_i32_0 = arith.constant 0 : i32
    %c0_i32_1 = arith.constant 0 : i32
    return %c0_i32, %c0_i32_0 : i32, i32
  }
  func.func @transform_6(%arg0: i32) -> (i32, i32) {
    %c0_i32 = arith.constant 0 : i32
    %c0_i32_0 = arith.constant 0 : i32
    %c0_i32_1 = arith.constant 0 : i32
    return %c0_i32, %c0_i32_0 : i32, i32
  }
  func.func @transform_7(%arg0: i32) -> (i32, i32) {
    %c0_i32 = arith.constant 0 : i32
    %c0_i32_0 = arith.constant 0 : i32
    %c0_i32_1 = arith.constant 0 : i32
    return %c0_i32, %c0_i32_0 : i32, i32
  }
  func.func @transform_8(%arg0: i32) -> (i32, i32) {
    %c0_i32 = arith.constant 0 : i32
    %c0_i32_0 = arith.constant 0 : i32
    %c0_i32_1 = arith.constant 0 : i32
    return %c0_i32, %c0_i32_0 : i32, i32
  }
  func.func @transform_9(%arg0: i32) -> (i32, i32) {
    %c0_i32 = arith.constant 0 : i32
    %c0_i32_0 = arith.constant 0 : i32
    return %arg0, %c0_i32 : i32, i32
  }
}

</mosaic_0001>

<bundles_post_ra>
// kernel: net_forward.1
= control target key start
LH: loop header
LB: loop body
LE: loop exit
PB: predicated region body
PF: predicated region fallthrough
CT: control target
= control target key end

     0   :  { %14 = vsyncpa [#allocation3], 0  ;;  %s3518_s0 = inlined_call_operand.vmem [shape: bf16[8,784], index: 0, kind: input, shape index: {}]   ;;  %s3519_s1 = inlined_call_operand.hbm [shape: bf16[784,512], index: 1, kind: input, shape index: {}]   ;;  %s3520_s2 = inlined_call_operand.vmem [shape: f32[1,512], index: 2, kind: input, shape index: {}]   ;;  %s3521_s3 = inlined_call_operand.hbm [shape: bf16[512,256], index: 3, kind: input, shape index: {}]   ;;  %s3522_s4 = inlined_call_operand.vmem [shape: f32[1,256], index: 4, kind: input, shape index: {}]   ;;  %s3523_s5 = inlined_call_operand.vmem [shape: bf16[256,128], index: 5, kind: input, shape index: {}]   ;;  %s3524_s6 = inlined_call_operand.vmem [shape: f32[1,128], index: 6, kind: input, shape index: {}]   ;;  %s3525_s7 = inlined_call_operand.hbm [shape: bf16[128,128], index: 7, kind: input, shape index: {}]   ;;  %s3526_s8 = inlined_call_operand.vmem [shape: f32[1,128], index: 8, kind: input, shape index: {}]   ;;  %s3527_s9 = inlined_call_operand.vmem [shape: bf16[8,128], index: 9, kind: output, shape index: {}]  }
   0x1   :  { %15 = vsyncpa [#allocation5], 0  ;;  %s3300_s30 = smov [#allocation4]   ;;  %s3230_s13 = scalar_lea.hbm %s3521_s3, 8192 }
   0x2   :  { %s37_s10 = sshll.u32 %s3300_s30, 4  ;;  %p3231_p0 = scmp.ne.s32.totalorder %s3521_s3, %s3230_s13  ;;  %s38_s10 = int_to_ptr.vmem [resolvable:$true] %s37_s10 }
   0x3   :  { %p3234_p1 = scmp.lt.u32.totalorder %s3230_s13, %s3521_s3 }
   0x5   :  { %p3236_p2 = pnand %p3234_p1, %p3231_p0 }
   0x7   :  { %3239 = shalt.err (!%p3236_p2)
}
   0x8   :  { %s3240_s18 = scalar_lea.vmem %s38_s10, 8192  ;;  %p3245_p4 = scmp.lt.s32.totalorder %s38_s10, %s38_s10 }
   0x9   :  { %p3241_p3 = scmp.ne.s32.totalorder %s38_s10, %s3240_s18  ;;  %p3246_p5 = scmp.lt.s32.totalorder %s3240_s18, %s3240_s18 }
   0xb   :  { %p3247_p6 = por %p3246_p5, %p3245_p4 }
   0xd   :  { %p3248_p7 = pnand %p3247_p6, %p3241_p3 }
   0xf   :  { %3251 = shalt.err (!%p3248_p7)
}
  0x10   :  { %s3301_s19 = smov 128   ;;  %s3302_s20 = smov 8  }
  0x11   :  { %43 = dma.hbm_to_vmem [thread:$0]  %s3521_s3, 8192, %s38_s10, [#allocation5], %s3301_s19, %s3301_s19, %s3302_s20  }
  0x12   :  { %s3303_s23 = smov [#allocation2]   ;;  %s3252_s27 = scalar_lea.hbm %s3519_s1, 25088 }
  0x13   :  { %s23_s24 = sshll.u32 %s3303_s23, 4  ;;  %p3253_p8 = scmp.ne.s32.totalorder %s3519_s1, %s3252_s27  ;;  %s24_s24 = int_to_ptr.vmem [resolvable:$true] %s23_s24 }
  0x14   :  { %p3256_p9 = scmp.lt.u32.totalorder %s3252_s27, %s3519_s1 }
  0x16   :  { %p3258_p10 = pnand %p3256_p9, %p3253_p8 }
  0x18   :  { %3261 = shalt.err (!%p3258_p10)
}
  0x19   :  { %s3262_s12 = scalar_lea.vmem %s24_s24, 25088  ;;  %p3267_p12 = scmp.lt.s32.totalorder %s24_s24, %s24_s24 }
  0x1a   :  { %p3263_p11 = scmp.ne.s32.totalorder %s24_s24, %s3262_s12  ;;  %p3268_p13 = scmp.lt.s32.totalorder %s3262_s12, %s3262_s12 }
  0x1c   :  { %p3269_p0 = por %p3268_p13, %p3267_p12 }
  0x1e   :  { %p3270_p1 = pnand %p3269_p0, %p3263_p11 }
  0x20   :  { %3273 = shalt.err (!%p3270_p1)
}
  0x21   :  { %s3304_s3 = smov 256   ;;  %s3305_s10 = smov 16  }
  0x22   :  { %29 = dma.hbm_to_vmem [thread:$0]  %s3519_s1, 25088, %s24_s24, [#allocation3], %s3304_s3, %s3304_s3, %s3305_s10  }
  0x23   :  { %s3306_s15 = smov [#allocation6]   ;;  %s3274_s19 = scalar_lea.hbm %s3525_s7, 1024 }
  0x24   :  { %s55_s16 = sshll.u32 %s3306_s15, 4  ;;  %p3275_p2 = scmp.ne.s32.totalorder %s3525_s7, %s3274_s19  ;;  %s56_s16 = int_to_ptr.vmem [resolvable:$true] %s55_s16 }
  0x25   :  { %p3278_p3 = scmp.lt.u32.totalorder %s3274_s19, %s3525_s7 }
  0x27   :  { %p3280_p4 = pnand %p3278_p3, %p3275_p2 }
  0x29   :  { %3283 = shalt.err (!%p3280_p4)
}
  0x2a   :  { %s3284_s25 = scalar_lea.vmem %s56_s16, 1024  ;;  %p3289_p6 = scmp.lt.s32.totalorder %s56_s16, %s56_s16 }
  0x2b   :  { %p3285_p5 = scmp.ne.s32.totalorder %s56_s16, %s3284_s25  ;;  %p3290_p7 = scmp.lt.s32.totalorder %s3284_s25, %s3284_s25 }
  0x2d   :  { %p3291_p8 = por %p3290_p7, %p3289_p6 }
  0x2f   :  { %p3292_p9 = pnand %p3291_p8, %p3285_p5 }
  0x31   :  { %3295 = shalt.err (!%p3292_p9)
}
  0x32   :  { %s3307_s1 = smov 64   ;;  %s3308_s24 = smov 4  }
  0x33   :  { %61 = dma.hbm_to_vmem [thread:$0]  %s3525_s7, 1024, %s56_s16, [#allocation5], %s3307_s1, %s3307_s1, %s3308_s24  }
  0x34   :  { %3296 = dma.done.wait [#allocation3], 25088  }
  0x35   :  { %3297 = vsyncadd [#allocation3], 4294942208 }
  0x36   :  { %3298 = dma.done.wait [#allocation5], 9216  }
  0x37   :  { %3299 = vsyncadd [#allocation5], 4294958080  ;;  %v3309_v0 = vmov 0   ;;  %v2808_v1 = vld [vmem:[#allocation2 + $0x4] ss:$16 sps:$4 sm:$0xff]   ;;  %vm1300_vm0 = vcmask 130048  }
  0x38   :  { %1459 = vmatprep.mubr.bf16.mxu1 %v3309_v0  ;;  %v2810_v2 = vld [vmem:[#allocation2 + $0x604] ss:$16 sps:$4 sm:$0xff]   ;;  %1304 = vmatprep.subr.bf16.mxu0 %v2808_v1  ;;  %v2812_v3 = vld [vmem:[#allocation2] ss:$16 sps:$4 sm:$0xff]   ;;  %v2816_v6 = vld [vmem:[#allocation2 + $0x8] ss:$16 sps:$4 sm:$0xff]  }
  0x39   :  { %v2813_v4 = vld [vmem:[#allocation2 + $0x600] ss:$16 sps:$4 sm:$0xff]   ;;  %1427 = vmatprep.subr.bf16.mxu1 %v2810_v2  ;;  %v2814_v5 = vld [vmem:[#allocation2 + $0x24] ss:$16 sps:$4 sm:$0xff]   ;;  %1305 = vmatpush1.bf16.msra.mxu0 %v2812_v3  ;;  %v2818_v7 = vld [vmem:[#allocation2 + $0xc] ss:$16 sps:$4 sm:$0xff]  }
  0x3a   :  { %1428 = vmatpush1.bf16.msra.mxu1 %v2813_v4  ;;  %1306 = vmatprep.subr.bf16.mxu0 %v2814_v5  ;;  %v2819_v8 = vld [vmem:[#allocation2 + $0x20] ss:$16 sps:$4 sm:$0xff]   ;;  %v2820_v9 = vld [vmem:[%s3518_s0 + $0x18] ss:$0 sps:$4 sm:$0xff]   ;;  %v2821_v10 = vld [vmem:[#allocation2 + $0x44] ss:$16 sps:$4 sm:$0xff]  }
  0x3b   :  { %1468 = vmatprep.subr.bf16.mxu1 %v2818_v7  ;;  %v2823_v11 = vld [vmem:[#allocation2 + $0x28] ss:$16 sps:$4 sm:$0xff]   ;;  %v2825_v12 = vld [vmem:[#allocation2 + $0x2c] ss:$16 sps:$4 sm:$0xff]   ;;  %v2826_v13 = vld [vmem:[#allocation2 + $0x40] ss:$16 sps:$4 sm:$0xff]  }
  0x3c   :  { %v2827_v14 = vld [vmem:[#allocation2 + $0x64] ss:$16 sps:$4 sm:$0xff]   ;;  %v2831_v15 = vld [vmem:[#allocation2 + $0x4c] ss:$16 sps:$4 sm:$0xff]   ;;  %v2829_v16 = vld [vmem:[#allocation2 + $0x48] ss:$16 sps:$4 sm:$0xff]  }
  0x3d   :  { %2621 = vmatmul.mubr.msk.bf16.vlgmr.msra.gmra.mrb[0].mxu1 %vm1300_vm0, %v2820_v9  ;;  %1307 = vmatpush1.bf16.msra.mxu0 %v2819_v8  ;;  %v2832_v17 = vld [vmem:[#allocation2 + $0x60] ss:$16 sps:$4 sm:$0xff]   ;;  %v2833_v18 = vld [vmem:[#allocation2 + $0x84] ss:$16 sps:$4 sm:$0xff]   ;;  %v2837_v19 = vld [vmem:[#allocation2 + $0x6c] ss:$16 sps:$4 sm:$0xff]  }
  0x3e   :  { %1469 = vmatpush1.bf16.msra.mxu1 %v2816_v6  ;;  %1308 = vmatprep.subr.bf16.mxu0 %v2821_v10  ;;  %v2835_v20 = vld [vmem:[#allocation2 + $0x68] ss:$16 sps:$4 sm:$0xff]   ;;  %v2838_v21 = vld [vmem:[#allocation2 + $0x80] ss:$16 sps:$4 sm:$0xff]   ;;  %v2839_v22 = vld [vmem:[#allocation2 + $0xa4] ss:$16 sps:$4 sm:$0xff]  }
  0x3f   :  { %1470 = vmatprep.subr.bf16.mxu1 %v2825_v12  ;;  %v2843_v23 = vld [vmem:[#allocation2 + $0x8c] ss:$16 sps:$4 sm:$0xff]   ;;  %v2841_v24 = vld [vmem:[#allocation2 + $0x88] ss:$16 sps:$4 sm:$0xff]   ;;  %v2844_v25 = vld [vmem:[#allocation2 + $0xa0] ss:$16 sps:$4 sm:$0xff]  }
  0x40   :  { %v2845_v26 = vld [vmem:[#allocation2 + $0xc4] ss:$16 sps:$4 sm:$0xff]   ;;  %v2849_v27 = vld [vmem:[#allocation2 + $0xac] ss:$16 sps:$4 sm:$0xff]   ;;  %v2847_v28 = vld [vmem:[#allocation2 + $0xa8] ss:$16 sps:$4 sm:$0xff]  }
  0x41   :  { %1309 = vmatpush1.bf16.msra.mxu0 %v2826_v13  ;;  %v2850_v29 = vld [vmem:[#allocation2 + $0xc0] ss:$16 sps:$4 sm:$0xff]   ;;  %v2851_v30 = vld [vmem:[#allocation2 + $0xe4] ss:$16 sps:$4 sm:$0xff]   ;;  %v2855_v31 = vld [vmem:[#allocation2 + $0xcc] ss:$16 sps:$4 sm:$0xff]  }
  0x42   :  { %1471 = vmatpush1.bf16.msra.mxu1 %v2823_v11  ;;  %1310 = vmatprep.subr.bf16.mxu0 %v2827_v14  ;;  %v2853_v32 = vld [vmem:[#allocation2 + $0xc8] ss:$16 sps:$4 sm:$0xff]   ;;  %v2856_v33 = vld [vmem:[#allocation2 + $0xe0] ss:$16 sps:$4 sm:$0xff]   ;;  %v2857_v34 = vld [vmem:[#allocation2 + $0x104] ss:$16 sps:$4 sm:$0xff]  }
  0x43   :  { %1472 = vmatprep.subr.bf16.mxu1 %v2831_v15  ;;  %v2861_v35 = vld [vmem:[#allocation2 + $0xec] ss:$16 sps:$4 sm:$0xff]   ;;  %v2859_v36 = vld [vmem:[#allocation2 + $0xe8] ss:$16 sps:$4 sm:$0xff]   ;;  %v2862_v37 = vld [vmem:[#allocation2 + $0x100] ss:$16 sps:$4 sm:$0xff]  }
  0x44   :  { %v2863_v38 = vld [vmem:[#allocation2 + $0x124] ss:$16 sps:$4 sm:$0xff]   ;;  %v2867_v39 = vld [vmem:[#allocation2 + $0x10c] ss:$16 sps:$4 sm:$0xff]   ;;  %v2865_v40 = vld [vmem:[#allocation2 + $0x108] ss:$16 sps:$4 sm:$0xff]  }
  0x45   :  { %1311 = vmatpush1.bf16.msra.mxu0 %v2832_v17  ;;  %v2868_v41 = vld [vmem:[#allocation2 + $0x120] ss:$16 sps:$4 sm:$0xff]   ;;  %v2869_v42 = vld [vmem:[#allocation2 + $0x144] ss:$16 sps:$4 sm:$0xff]   ;;  %v2873_v43 = vld [vmem:[#allocation2 + $0x12c] ss:$16 sps:$4 sm:$0xff]  }
  0x46   :  { %1473 = vmatpush1.bf16.msra.mxu1 %v2829_v16  ;;  %1312 = vmatprep.subr.bf16.mxu0 %v2833_v18  ;;  %v2871_v44 = vld [vmem:[#allocation2 + $0x128] ss:$16 sps:$4 sm:$0xff]   ;;  %v2874_v45 = vld [vmem:[#allocation2 + $0x140] ss:$16 sps:$4 sm:$0xff]   ;;  %v2875_v46 = vld [vmem:[#allocation2 + $0x164] ss:$16 sps:$4 sm:$0xff]  }
  0x47   :  { %1474 = vmatprep.subr.bf16.mxu1 %v2837_v19  ;;  %v2879_v47 = vld [vmem:[#allocation2 + $0x14c] ss:$16 sps:$4 sm:$0xff]   ;;  %v2877_v48 = vld [vmem:[#allocation2 + $0x148] ss:$16 sps:$4 sm:$0xff]   ;;  %v74_v49 = vld [vmem:[%s3518_s0] sm:$0xff]  ;;  %vm3311_vm1 = vmmov 0  }
  0x48   :  { %v2880_v50 = vld [vmem:[#allocation2 + $0x160] ss:$16 sps:$4 sm:$0xff]   ;;  %v2881_v51 = vld [vmem:[#allocation2 + $0x184] ss:$16 sps:$4 sm:$0xff]   ;;  %v2419_v52 = vcombine.high %v74_v49, %v74_v49  ;;  %v2885_v53 = vld [vmem:[#allocation2 + $0x16c] ss:$16 sps:$4 sm:$0xff]   ;;  %v2418_v7 = vcombine.low %v74_v49, %v74_v49 }
  0x49   :  { %1313 = vmatpush1.bf16.msra.mxu0 %v2838_v21  ;;  %v2883_v54 = vld [vmem:[#allocation2 + $0x168] ss:$16 sps:$4 sm:$0xff]   ;;  %v2886_v55 = vld [vmem:[#allocation2 + $0x180] ss:$16 sps:$4 sm:$0xff]   ;;  %v2887_v56 = vld [vmem:[#allocation2 + $0x1a4] ss:$16 sps:$4 sm:$0xff]  }
  0x4a   :  { %1475 = vmatpush1.bf16.msra.mxu1 %v2835_v20  ;;  %1314 = vmatprep.subr.bf16.mxu0 %v2839_v22  ;;  %v2891_v57 = vld [vmem:[#allocation2 + $0x18c] ss:$16 sps:$4 sm:$0xff]   ;;  %v2889_v58 = vld [vmem:[#allocation2 + $0x188] ss:$16 sps:$4 sm:$0xff]   ;;  %v2892_v59 = vld [vmem:[#allocation2 + $0x1a0] ss:$16 sps:$4 sm:$0xff]  }
  0x4b   :  { %1476 = vmatprep.subr.bf16.mxu1 %v2843_v23  ;;  %1336 = vmatprep.mubr.bf16.mxu0 %v2419_v52  ;;  %v2893_v60 = vld [vmem:[#allocation2 + $0x1c4] ss:$16 sps:$4 sm:$0xff]   ;;  %v2897_v61 = vld [vmem:[#allocation2 + $0x1ac] ss:$16 sps:$4 sm:$0xff]   ;;  %v2895_v62 = vld [vmem:[#allocation2 + $0x1a8] ss:$16 sps:$4 sm:$0xff]  }
  0x4c   :  { %1500 = vmatprep.mubr.bf16.mxu1 %v2419_v52  ;;  %v2898_v63 = vld [vmem:[#allocation2 + $0x1c0] ss:$16 sps:$4 sm:$0xff]   ;;  %v2899_v1 = vld [vmem:[#allocation2 + $0x1e4] ss:$16 sps:$4 sm:$0xff]   ;;  %v2903_v2 = vld [vmem:[#allocation2 + $0x1cc] ss:$16 sps:$4 sm:$0xff]  }
  0x4d   :  { %1315 = vmatpush1.bf16.msra.mxu0 %v2844_v25  ;;  %v2901_v3 = vld [vmem:[#allocation2 + $0x1c8] ss:$16 sps:$4 sm:$0xff]   ;;  %v2904_v4 = vld [vmem:[#allocation2 + $0x1e0] ss:$16 sps:$4 sm:$0xff]   ;;  %v2909_v5 = vld [vmem:[#allocation2 + $0x204] ss:$16 sps:$4 sm:$0xff]  }
  0x4e   :  { %1477 = vmatpush1.bf16.msra.mxu1 %v2841_v24  ;;  %1316 = vmatprep.subr.bf16.mxu0 %v2845_v26  ;;  %v2912_v6 = vld [vmem:[#allocation2 + $0x1ec] ss:$16 sps:$4 sm:$0xff]   ;;  %v2907_v8 = vld [vmem:[#allocation2 + $0x200] ss:$16 sps:$4 sm:$0xff]   ;;  %v2910_v9 = vld [vmem:[#allocation2 + $0x1e8] ss:$16 sps:$4 sm:$0xff]  }
  0x4f   :  { %1478 = vmatprep.subr.bf16.mxu1 %v2849_v27  ;;  %v2915_v10 = vld [vmem:[#allocation2 + $0x224] ss:$16 sps:$4 sm:$0xff]   ;;  %v2918_v11 = vld [vmem:[#allocation2 + $0x20c] ss:$16 sps:$4 sm:$0xff]   ;;  %v2913_v12 = vld [vmem:[#allocation2 + $0x220] ss:$16 sps:$4 sm:$0xff]  }
  0x50   :  { %v2916_v13 = vld [vmem:[#allocation2 + $0x208] ss:$16 sps:$4 sm:$0xff]   ;;  %v2921_v14 = vld [vmem:[#allocation2 + $0x244] ss:$16 sps:$4 sm:$0xff]   ;;  %v2924_v15 = vld [vmem:[#allocation2 + $0x22c] ss:$16 sps:$4 sm:$0xff]  }
  0x51   :  { %1317 = vmatpush1.bf16.msra.mxu0 %v2850_v29  ;;  %v2919_v16 = vld [vmem:[#allocation2 + $0x240] ss:$16 sps:$4 sm:$0xff]   ;;  %v2922_v17 = vld [vmem:[#allocation2 + $0x228] ss:$16 sps:$4 sm:$0xff]   ;;  %v2927_v18 = vld [vmem:[#allocation2 + $0x264] ss:$16 sps:$4 sm:$0xff]  }
  0x52   :  { %1479 = vmatpush1.bf16.msra.mxu1 %v2847_v28  ;;  %1318 = vmatprep.subr.bf16.mxu0 %v2851_v30  ;;  %v2930_v19 = vld [vmem:[#allocation2 + $0x24c] ss:$16 sps:$4 sm:$0xff]   ;;  %v2925_v20 = vld [vmem:[#allocation2 + $0x260] ss:$16 sps:$4 sm:$0xff]   ;;  %v2928_v21 = vld [vmem:[#allocation2 + $0x248] ss:$16 sps:$4 sm:$0xff]  }
  0x53   :  { %1480 = vmatprep.subr.bf16.mxu1 %v2855_v31  ;;  %v2933_v22 = vld [vmem:[#allocation2 + $0x284] ss:$16 sps:$4 sm:$0xff]   ;;  %v2936_v23 = vld [vmem:[#allocation2 + $0x26c] ss:$16 sps:$4 sm:$0xff]   ;;  %v2931_v24 = vld [vmem:[#allocation2 + $0x280] ss:$16 sps:$4 sm:$0xff]  }
  0x54   :  { %v2934_v25 = vld [vmem:[#allocation2 + $0x268] ss:$16 sps:$4 sm:$0xff]   ;;  %v2939_v26 = vld [vmem:[#allocation2 + $0x2a4] ss:$16 sps:$4 sm:$0xff]   ;;  %v2942_v27 = vld [vmem:[#allocation2 + $0x28c] ss:$16 sps:$4 sm:$0xff]  }
  0x55   :  { %1319 = vmatpush1.bf16.msra.mxu0 %v2856_v33  ;;  %v2937_v28 = vld [vmem:[#allocation2 + $0x2a0] ss:$16 sps:$4 sm:$0xff]   ;;  %v2940_v29 = vld [vmem:[#allocation2 + $0x288] ss:$16 sps:$4 sm:$0xff]   ;;  %v2945_v30 = vld [vmem:[#allocation2 + $0x2c4] ss:$16 sps:$4 sm:$0xff]  }
  0x56   :  { %1481 = vmatpush1.bf16.msra.mxu1 %v2853_v32  ;;  %1320 = vmatprep.subr.bf16.mxu0 %v2857_v34  ;;  %v2948_v31 = vld [vmem:[#allocation2 + $0x2ac] ss:$16 sps:$4 sm:$0xff]   ;;  %v2943_v33 = vld [vmem:[#allocation2 + $0x2c0] ss:$16 sps:$4 sm:$0xff]   ;;  %v2946_v34 = vld [vmem:[#allocation2 + $0x2a8] ss:$16 sps:$4 sm:$0xff]  }
  0x57   :  { %1482 = vmatprep.subr.bf16.mxu1 %v2861_v35  ;;  %v3409_v32 = vld [vmem:[%s3518_s0 + $0x8] sm:$0xff]  ;;  %v2975_v52 = vld [vmem:[#allocation2 + $0x364] ss:$16 sps:$4 sm:$0xff]  }
  0x58   :  { %v2421_v35 = vcombine.high %v3409_v32, %v3409_v32  ;;  %v2972_v49 = vld [vmem:[#allocation2 + $0x32c] ss:$16 sps:$4 sm:$0xff]  }
  0x59   :  { %1321 = vmatpush1.bf16.msra.mxu0 %v2862_v37  ;;  %v2954_v37 = vld [vmem:[#allocation2 + $0x2cc] ss:$16 sps:$4 sm:$0xff]  }
  0x5a   :  { %1483 = vmatpush1.bf16.msra.mxu1 %v2859_v36  ;;  %1322 = vmatprep.subr.bf16.mxu0 %v2863_v38  ;;  %v2951_v36 = vld [vmem:[#allocation2 + $0x2e4] ss:$16 sps:$4 sm:$0xff]   ;;  %v2949_v38 = vld [vmem:[#allocation2 + $0x2e0] ss:$16 sps:$4 sm:$0xff]  }
  0x5b   :  { %1484 = vmatprep.subr.bf16.mxu1 %v2867_v39  ;;  %v2952_v39 = vld [vmem:[#allocation2 + $0x2c8] ss:$16 sps:$4 sm:$0xff]  }
  0x5d   :  { %1323 = vmatpush1.bf16.msra.mxu0 %v2868_v41  ;;  %v2960_v41 = vld [vmem:[#allocation2 + $0x2ec] ss:$16 sps:$4 sm:$0xff]  }
  0x5e   :  { %1485 = vmatpush1.bf16.msra.mxu1 %v2865_v40  ;;  %1324 = vmatprep.subr.bf16.mxu0 %v2869_v42  ;;  %v2957_v40 = vld [vmem:[#allocation2 + $0x304] ss:$16 sps:$4 sm:$0xff]   ;;  %v2955_v42 = vld [vmem:[#allocation2 + $0x300] ss:$16 sps:$4 sm:$0xff]  }
  0x5f   :  { %1486 = vmatprep.subr.bf16.mxu1 %v2873_v43  ;;  %v2958_v43 = vld [vmem:[#allocation2 + $0x2e8] ss:$16 sps:$4 sm:$0xff]  }
  0x61   :  { %1325 = vmatpush1.bf16.msra.mxu0 %v2874_v45  ;;  %v2966_v45 = vld [vmem:[#allocation2 + $0x30c] ss:$16 sps:$4 sm:$0xff]  }
  0x62   :  { %1487 = vmatpush1.bf16.msra.mxu1 %v2871_v44  ;;  %1326 = vmatprep.subr.bf16.mxu0 %v2875_v46  ;;  %v2963_v44 = vld [vmem:[#allocation2 + $0x324] ss:$16 sps:$4 sm:$0xff]   ;;  %v2961_v46 = vld [vmem:[#allocation2 + $0x320] ss:$16 sps:$4 sm:$0xff]  }
  0x63   :  { %1488 = vmatprep.subr.bf16.mxu1 %v2879_v47  ;;  %v2964_v47 = vld [vmem:[#allocation2 + $0x308] ss:$16 sps:$4 sm:$0xff]  }
  0x65   :  { %1327 = vmatpush1.bf16.msra.mxu0 %v2880_v50  ;;  %v2967_v50 = vld [vmem:[#allocation2 + $0x340] ss:$16 sps:$4 sm:$0xff]  }
  0x66   :  { %1489 = vmatpush1.bf16.msra.mxu1 %v2877_v48  ;;  %1328 = vmatprep.subr.bf16.mxu0 %v2881_v51  ;;  %v2969_v48 = vld [vmem:[#allocation2 + $0x344] ss:$16 sps:$4 sm:$0xff]   ;;  %v2970_v51 = vld [vmem:[#allocation2 + $0x328] ss:$16 sps:$4 sm:$0xff]  }
  0x67   :  { %1490 = vmatprep.subr.bf16.mxu1 %v2885_v53  ;;  %v2978_v53 = vld [vmem:[#allocation2 + $0x34c] ss:$16 sps:$4 sm:$0xff]  }
  0x69   :  { %1329 = vmatpush1.bf16.msra.mxu0 %v2886_v55  ;;  %v2976_v55 = vld [vmem:[#allocation2 + $0x348] ss:$16 sps:$4 sm:$0xff]  }
  0x6a   :  { %1491 = vmatpush1.bf16.msra.mxu1 %v2883_v54  ;;  %1330 = vmatprep.subr.bf16.mxu0 %v2887_v56  ;;  %v2973_v54 = vld [vmem:[#allocation2 + $0x360] ss:$16 sps:$4 sm:$0xff]   ;;  %v2981_v56 = vld [vmem:[#allocation2 + $0x384] ss:$16 sps:$4 sm:$0xff]  }
  0x6b   :  { %1492 = vmatprep.subr.bf16.mxu1 %v2891_v57  ;;  %v2984_v57 = vld [vmem:[#allocation2 + $0x36c] ss:$16 sps:$4 sm:$0xff]  }
  0x6d   :  { %1331 = vmatpush1.bf16.msra.mxu0 %v2892_v59  ;;  %v2982_v59 = vld [vmem:[#allocation2 + $0x368] ss:$16 sps:$4 sm:$0xff]  }
  0x6e   :  { %1493 = vmatpush1.bf16.msra.mxu1 %v2889_v58  ;;  %1332 = vmatprep.subr.bf16.mxu0 %v2893_v60  ;;  %v2979_v58 = vld [vmem:[#allocation2 + $0x380] ss:$16 sps:$4 sm:$0xff]   ;;  %v2987_v60 = vld [vmem:[#allocation2 + $0x3a4] ss:$16 sps:$4 sm:$0xff]  }
  0x6f   :  { %1494 = vmatprep.subr.bf16.mxu1 %v2897_v61  ;;  %v2990_v61 = vld [vmem:[#allocation2 + $0x38c] ss:$16 sps:$4 sm:$0xff]  }
  0x71   :  { %1333 = vmatpush1.bf16.msra.mxu0 %v2898_v63  ;;  %v2988_v63 = vld [vmem:[#allocation2 + $0x388] ss:$16 sps:$4 sm:$0xff]  }
  0x72   :  { %1495 = vmatpush1.bf16.msra.mxu1 %v2895_v62  ;;  %1334 = vmatprep.subr.bf16.mxu0 %v2899_v1  ;;  %v2985_v62 = vld [vmem:[#allocation2 + $0x3a0] ss:$16 sps:$4 sm:$0xff]   ;;  %v2993_v1 = vld [vmem:[#allocation2 + $0x3c4] ss:$16 sps:$4 sm:$0xff]  }
  0x73   :  { %1496 = vmatprep.subr.bf16.mxu1 %v2903_v2  ;;  %v2996_v2 = vld [vmem:[#allocation2 + $0x3ac] ss:$16 sps:$4 sm:$0xff]  }
  0x75   :  { %1335 = vmatpush1.bf16.msra.mxu0 %v2904_v4  ;;  %v2994_v4 = vld [vmem:[#allocation2 + $0x3a8] ss:$16 sps:$4 sm:$0xff]  }
  0x76   :  { %1497 = vmatpush1.bf16.msra.mxu1 %v2901_v3  ;;  %1345 = vmatprep.subr.bf16.mxu0 %v2909_v5  ;;  %v2991_v3 = vld [vmem:[#allocation2 + $0x3c0] ss:$16 sps:$4 sm:$0xff]   ;;  %v2999_v5 = vld [vmem:[#allocation2 + $0x3e4] ss:$16 sps:$4 sm:$0xff]  }
  0x77   :  { %1498 = vmatprep.subr.bf16.mxu1 %v2912_v6  ;;  %v3002_v6 = vld [vmem:[#allocation2 + $0x3cc] ss:$16 sps:$4 sm:$0xff]  }
  0x78   :  { %1337 = vmatmul.mubr.bf16.vlgmr.msra.gmra.mrb[0].mxu0 %v2418_v7 }
  0x79   :  { %1346 = vmatpush1.bf16.msra.mxu0 %v2907_v8  ;;  %1377 = vmatprep.mubr.bf16.mxu0 %v2421_v35  ;;  %v3000_v8 = vld [vmem:[#allocation2 + $0x3c8] ss:$16 sps:$4 sm:$0xff]  }
  0x7a   :  { %1499 = vmatpush1.bf16.msra.mxu1 %v2910_v9  ;;  %1347 = vmatprep.subr.bf16.mxu0 %v2915_v10  ;;  %v3007_v9 = vld [vmem:[#allocation2 + $0x404] ss:$16 sps:$4 sm:$0xff]   ;;  %v3010_v10 = vld [vmem:[#allocation2 + $0x3ec] ss:$16 sps:$4 sm:$0xff]  }
  0x7b   :  { %1509 = vmatprep.subr.bf16.mxu1 %v2918_v11  ;;  %v2420_v11 = vcombine.low %v3409_v32, %v3409_v32  ;;  %v3037_v32 = vld [vmem:[#allocation2 + $0x4a4] ss:$16 sps:$4 sm:$0xff]  }
  0x7d   :  { %1501 = vmatmul.mubr.bf16.vlgmr.msra.gmra.mrb[4].mxu1 %v2418_v7  ;;  %1348 = vmatpush1.bf16.msra.mxu0 %v2913_v12  ;;  %v2997_v7 = vld [vmem:[#allocation2 + $0x3e0] ss:$16 sps:$4 sm:$0xff]  }
  0x7e   :  { %1510 = vmatpush1.bf16.msra.mxu1 %v2916_v13  ;;  %1349 = vmatprep.subr.bf16.mxu0 %v2921_v14  ;;  %v3005_v12 = vld [vmem:[#allocation2 + $0x400] ss:$16 sps:$4 sm:$0xff]   ;;  %v3008_v13 = vld [vmem:[#allocation2 + $0x3e8] ss:$16 sps:$4 sm:$0xff]   ;;  %v3013_v14 = vld [vmem:[#allocation2 + $0x424] ss:$16 sps:$4 sm:$0xff]  }
  0x7f   :  { %1511 = vmatprep.subr.bf16.mxu1 %v2924_v15  ;;  %1541 = vmatprep.mubr.bf16.mxu1 %v2421_v35  ;;  %v3016_v15 = vld [vmem:[#allocation2 + $0x40c] ss:$16 sps:$4 sm:$0xff]   ;;  %v3038_v35 = vld [vmem:[#allocation2 + $0x488] ss:$16 sps:$4 sm:$0xff]  }
  0x81   :  { %1350 = vmatpush1.bf16.msra.mxu0 %v2919_v16  ;;  %v3418_v16 = vld [vmem:[%s3518_s0 + $0x10] sm:$0xff] }
  0x82   :  { %1512 = vmatpush1.bf16.msra.mxu1 %v2922_v17  ;;  %1351 = vmatprep.subr.bf16.mxu0 %v2927_v18  ;;  %v2423_v17 = vcombine.high %v3418_v16, %v3418_v16  ;;  %v3011_v18 = vld [vmem:[#allocation2 + $0x420] ss:$16 sps:$4 sm:$0xff]  }
  0x83   :  { %1513 = vmatprep.subr.bf16.mxu1 %v2930_v19  ;;  %v3014_v19 = vld [vmem:[#allocation2 + $0x408] ss:$16 sps:$4 sm:$0xff]  }
  0x85   :  { %1352 = vmatpush1.bf16.msra.mxu0 %v2925_v20  ;;  %v3019_v20 = vld [vmem:[#allocation2 + $0x444] ss:$16 sps:$4 sm:$0xff]  }
  0x86   :  { %1514 = vmatpush1.bf16.msra.mxu1 %v2928_v21  ;;  %1353 = vmatprep.subr.bf16.mxu0 %v2933_v22  ;;  %v3022_v21 = vld [vmem:[#allocation2 + $0x42c] ss:$16 sps:$4 sm:$0xff]   ;;  %v3017_v22 = vld [vmem:[#allocation2 + $0x440] ss:$16 sps:$4 sm:$0xff]  }
  0x87   :  { %1515 = vmatprep.subr.bf16.mxu1 %v2936_v23  ;;  %v3020_v23 = vld [vmem:[#allocation2 + $0x428] ss:$16 sps:$4 sm:$0xff]  }
  0x89   :  { %1354 = vmatpush1.bf16.msra.mxu0 %v2931_v24  ;;  %v3025_v24 = vld [vmem:[#allocation2 + $0x464] ss:$16 sps:$4 sm:$0xff]  }
  0x8a   :  { %1516 = vmatpush1.bf16.msra.mxu1 %v2934_v25  ;;  %1355 = vmatprep.subr.bf16.mxu0 %v2939_v26  ;;  %v3028_v25 = vld [vmem:[#allocation2 + $0x44c] ss:$16 sps:$4 sm:$0xff]   ;;  %v3023_v26 = vld [vmem:[#allocation2 + $0x460] ss:$16 sps:$4 sm:$0xff]  }
  0x8b   :  { %1517 = vmatprep.subr.bf16.mxu1 %v2942_v27  ;;  %v3026_v27 = vld [vmem:[#allocation2 + $0x448] ss:$16 sps:$4 sm:$0xff]  }
  0x8d   :  { %1356 = vmatpush1.bf16.msra.mxu0 %v2937_v28  ;;  %v3031_v28 = vld [vmem:[#allocation2 + $0x484] ss:$16 sps:$4 sm:$0xff]  }
  0x8e   :  { %1518 = vmatpush1.bf16.msra.mxu1 %v2940_v29  ;;  %1357 = vmatprep.subr.bf16.mxu0 %v2945_v30  ;;  %v3034_v29 = vld [vmem:[#allocation2 + $0x46c] ss:$16 sps:$4 sm:$0xff]   ;;  %v3029_v30 = vld [vmem:[#allocation2 + $0x480] ss:$16 sps:$4 sm:$0xff]  }
  0x8f   :  { %1519 = vmatprep.subr.bf16.mxu1 %v2948_v31  ;;  %v3032_v31 = vld [vmem:[#allocation2 + $0x468] ss:$16 sps:$4 sm:$0xff]  }
  0x91   :  { %1358 = vmatpush1.bf16.msra.mxu0 %v2943_v33  ;;  %v3040_v33 = vld [vmem:[#allocation2 + $0x48c] ss:$16 sps:$4 sm:$0xff]  }
  0x92   :  { %1520 = vmatpush1.bf16.msra.mxu1 %v2946_v34  ;;  %1359 = vmatprep.subr.bf16.mxu0 %v2951_v36  ;;  %v3035_v34 = vld [vmem:[#allocation2 + $0x4a0] ss:$16 sps:$4 sm:$0xff]   ;;  %v3043_v36 = vld [vmem:[#allocation2 + $0x4c4] ss:$16 sps:$4 sm:$0xff]  }
  0x93   :  { %1521 = vmatprep.subr.bf16.mxu1 %v2954_v37  ;;  %v3046_v37 = vld [vmem:[#allocation2 + $0x4ac] ss:$16 sps:$4 sm:$0xff]  }
  0x95   :  { %1360 = vmatpush1.bf16.msra.mxu0 %v2949_v38  ;;  %v3041_v38 = vld [vmem:[#allocation2 + $0x4c0] ss:$16 sps:$4 sm:$0xff]  }
  0x96   :  { %1522 = vmatpush1.bf16.msra.mxu1 %v2952_v39  ;;  %1361 = vmatprep.subr.bf16.mxu0 %v2957_v40  ;;  %v3044_v39 = vld [vmem:[#allocation2 + $0x4a8] ss:$16 sps:$4 sm:$0xff]   ;;  %v3049_v40 = vld [vmem:[#allocation2 + $0x4e4] ss:$16 sps:$4 sm:$0xff]  }
  0x97   :  { %1523 = vmatprep.subr.bf16.mxu1 %v2960_v41  ;;  %v3052_v41 = vld [vmem:[#allocation2 + $0x4cc] ss:$16 sps:$4 sm:$0xff]  }
  0x99   :  { %1362 = vmatpush1.bf16.msra.mxu0 %v2955_v42  ;;  %v3047_v42 = vld [vmem:[#allocation2 + $0x4e0] ss:$16 sps:$4 sm:$0xff]  }
  0x9a   :  { %1524 = vmatpush1.bf16.msra.mxu1 %v2958_v43  ;;  %1363 = vmatprep.subr.bf16.mxu0 %v2963_v44  ;;  %v3050_v43 = vld [vmem:[#allocation2 + $0x4c8] ss:$16 sps:$4 sm:$0xff]   ;;  %v3055_v44 = vld [vmem:[#allocation2 + $0x504] ss:$16 sps:$4 sm:$0xff]  }
  0x9b   :  { %1525 = vmatprep.subr.bf16.mxu1 %v2966_v45  ;;  %v3058_v45 = vld [vmem:[#allocation2 + $0x4ec] ss:$16 sps:$4 sm:$0xff]  }
  0x9d   :  { %1364 = vmatpush1.bf16.msra.mxu0 %v2961_v46  ;;  %v3053_v46 = vld [vmem:[#allocation2 + $0x500] ss:$16 sps:$4 sm:$0xff]  }
  0x9e   :  { %1526 = vmatpush1.bf16.msra.mxu1 %v2964_v47  ;;  %1365 = vmatprep.subr.bf16.mxu0 %v2969_v48  ;;  %v3056_v47 = vld [vmem:[#allocation2 + $0x4e8] ss:$16 sps:$4 sm:$0xff]   ;;  %v3061_v48 = vld [vmem:[#allocation2 + $0x524] ss:$16 sps:$4 sm:$0xff]  }
  0x9f   :  { %1527 = vmatprep.subr.bf16.mxu1 %v2972_v49  ;;  %v3064_v49 = vld [vmem:[#allocation2 + $0x50c] ss:$16 sps:$4 sm:$0xff]  }
  0xa1   :  { %1366 = vmatpush1.bf16.msra.mxu0 %v2967_v50  ;;  %v3059_v50 = vld [vmem:[#allocation2 + $0x520] ss:$16 sps:$4 sm:$0xff]  }
  0xa2   :  { %1528 = vmatpush1.bf16.msra.mxu1 %v2970_v51  ;;  %1367 = vmatprep.subr.bf16.mxu0 %v2975_v52  ;;  %v3062_v51 = vld [vmem:[#allocation2 + $0x508] ss:$16 sps:$4 sm:$0xff]   ;;  %v3067_v52 = vld [vmem:[#allocation2 + $0x544] ss:$16 sps:$4 sm:$0xff]  }
  0xa3   :  { %1529 = vmatprep.subr.bf16.mxu1 %v2978_v53  ;;  %v3070_v53 = vld [vmem:[#allocation2 + $0x52c] ss:$16 sps:$4 sm:$0xff]  }
  0xa5   :  { %1368 = vmatpush1.bf16.msra.mxu0 %v2973_v54  ;;  %v3065_v54 = vld [vmem:[#allocation2 + $0x540] ss:$16 sps:$4 sm:$0xff]  }
  0xa6   :  { %1530 = vmatpush1.bf16.msra.mxu1 %v2976_v55  ;;  %1369 = vmatprep.subr.bf16.mxu0 %v2981_v56  ;;  %v3068_v55 = vld [vmem:[#allocation2 + $0x528] ss:$16 sps:$4 sm:$0xff]   ;;  %v3073_v56 = vld [vmem:[#allocation2 + $0x564] ss:$16 sps:$4 sm:$0xff]  }
  0xa7   :  { %1531 = vmatprep.subr.bf16.mxu1 %v2984_v57  ;;  %v3076_v57 = vld [vmem:[#allocation2 + $0x54c] ss:$16 sps:$4 sm:$0xff]  }
  0xa9   :  { %1370 = vmatpush1.bf16.msra.mxu0 %v2979_v58  ;;  %v3071_v58 = vld [vmem:[#allocation2 + $0x560] ss:$16 sps:$4 sm:$0xff]  }
  0xaa   :  { %1532 = vmatpush1.bf16.msra.mxu1 %v2982_v59  ;;  %1371 = vmatprep.subr.bf16.mxu0 %v2987_v60  ;;  %v3074_v59 = vld [vmem:[#allocation2 + $0x548] ss:$16 sps:$4 sm:$0xff]   ;;  %v3079_v60 = vld [vmem:[#allocation2 + $0x584] ss:$16 sps:$4 sm:$0xff]  }
  0xab   :  { %1533 = vmatprep.subr.bf16.mxu1 %v2990_v61  ;;  %v3082_v61 = vld [vmem:[#allocation2 + $0x56c] ss:$16 sps:$4 sm:$0xff]  }
  0xad   :  { %1372 = vmatpush1.bf16.msra.mxu0 %v2985_v62  ;;  %v3077_v62 = vld [vmem:[#allocation2 + $0x580] ss:$16 sps:$4 sm:$0xff]  }
  0xae   :  { %1534 = vmatpush1.bf16.msra.mxu1 %v2988_v63  ;;  %1373 = vmatprep.subr.bf16.mxu0 %v2993_v1  ;;  %v3080_v63 = vld [vmem:[#allocation2 + $0x568] ss:$16 sps:$4 sm:$0xff]   ;;  %v3085_v1 = vld [vmem:[#allocation2 + $0x5a4] ss:$16 sps:$4 sm:$0xff]  }
  0xaf   :  { %1535 = vmatprep.subr.bf16.mxu1 %v2996_v2  ;;  %v3088_v2 = vld [vmem:[#allocation2 + $0x58c] ss:$16 sps:$4 sm:$0xff]  }
  0xb1   :  { %1374 = vmatpush1.bf16.msra.mxu0 %v2991_v3  ;;  %v3083_v3 = vld [vmem:[#allocation2 + $0x5a0] ss:$16 sps:$4 sm:$0xff]  }
  0xb2   :  { %1536 = vmatpush1.bf16.msra.mxu1 %v2994_v4  ;;  %1375 = vmatprep.subr.bf16.mxu0 %v2999_v5  ;;  %v3086_v4 = vld [vmem:[#allocation2 + $0x588] ss:$16 sps:$4 sm:$0xff]   ;;  %v3091_v5 = vld [vmem:[#allocation2 + $0x5c4] ss:$16 sps:$4 sm:$0xff]  }
  0xb3   :  { %1537 = vmatprep.subr.bf16.mxu1 %v3002_v6  ;;  %v3094_v6 = vld [vmem:[#allocation2 + $0x5ac] ss:$16 sps:$4 sm:$0xff]  }
  0xb5   :  { %1376 = vmatpush1.bf16.msra.mxu0 %v2997_v7  ;;  %v3089_v7 = vld [vmem:[#allocation2 + $0x5c0] ss:$16 sps:$4 sm:$0xff]  }
  0xb6   :  { %1538 = vmatpush1.bf16.msra.mxu1 %v3000_v8  ;;  %1386 = vmatprep.subr.bf16.mxu0 %v3007_v9  ;;  %v3092_v8 = vld [vmem:[#allocation2 + $0x5a8] ss:$16 sps:$4 sm:$0xff]   ;;  %v3097_v9 = vld [vmem:[#allocation2 + $0x5e4] ss:$16 sps:$4 sm:$0xff]  }
  0xb7   :  { %1539 = vmatprep.subr.bf16.mxu1 %v3010_v10  ;;  %v3100_v10 = vld [vmem:[#allocation2 + $0x5cc] ss:$16 sps:$4 sm:$0xff]  }
  0xb8   :  { %1378 = vmatmul.mubr.bf16.vlgmr.msra.gmra.mrb[0].mxu0 %v2420_v11 }
  0xb9   :  { %1387 = vmatpush1.bf16.msra.mxu0 %v3005_v12  ;;  %1418 = vmatprep.mubr.bf16.mxu0 %v2423_v17  ;;  %v3098_v12 = vld [vmem:[#allocation2 + $0x5c8] ss:$16 sps:$4 sm:$0xff]  }
  0xba   :  { %1540 = vmatpush1.bf16.msra.mxu1 %v3008_v13  ;;  %1388 = vmatprep.subr.bf16.mxu0 %v3013_v14  ;;  %v3105_v13 = vld [vmem:[#allocation2 + $0x5ec] ss:$16 sps:$4 sm:$0xff]  }
  0xbb   :  { %1550 = vmatprep.subr.bf16.mxu1 %v3016_v15  ;;  %v3111_v14 = vld [vmem:[#allocation4 + $0x4] ss:$8 sps:$4 sm:$0xff]   ;;  %v2422_v15 = vcombine.low %v3418_v16, %v3418_v16  ;;  %v3115_v16 = vld [vmem:[#allocation4 + $0x20] ss:$8 sps:$4 sm:$0xff]  }
  0xbd   :  { %1542 = vmatmul.mubr.bf16.vlgmr.msra.gmra.mrb[4].mxu1 %v2420_v11  ;;  %1389 = vmatpush1.bf16.msra.mxu0 %v3011_v18  ;;  %v3095_v11 = vld [vmem:[#allocation2 + $0x5e0] ss:$16 sps:$4 sm:$0xff]  }
  0xbe   :  { %1551 = vmatpush1.bf16.msra.mxu1 %v3014_v19  ;;  %1390 = vmatprep.subr.bf16.mxu0 %v3019_v20  ;;  %v3109_v18 = vld [vmem:[#allocation4] ss:$8 sps:$4 sm:$0xff]   ;;  %v3108_v19 = vld [vmem:[#allocation2 + $0x60c] ss:$16 sps:$4 sm:$0xff]  }
  0xbf   :  { %1552 = vmatprep.subr.bf16.mxu1 %v3022_v21  ;;  %1582 = vmatprep.mubr.bf16.mxu1 %v2423_v17  ;;  %v3103_v17 = vld [vmem:[#allocation2 + $0x5e8] ss:$16 sps:$4 sm:$0xff]   ;;  %v3114_v20 = vld [vmem:[#allocation4 + $0x14] ss:$8 sps:$4 sm:$0xff]  }
  0xc0   :  { %v3106_v21 = vld [vmem:[#allocation2 + $0x608] ss:$16 sps:$4 sm:$0xff]  }
  0xc1   :  { %1391 = vmatpush1.bf16.msra.mxu0 %v3017_v22  ;;  %v3112_v22 = vld [vmem:[#allocation4 + $0x10] ss:$8 sps:$4 sm:$0xff]  }
  0xc2   :  { %1553 = vmatpush1.bf16.msra.mxu1 %v3020_v23  ;;  %1392 = vmatprep.subr.bf16.mxu0 %v3025_v24  ;;  %v3117_v23 = vld [vmem:[#allocation4 + $0x24] ss:$8 sps:$4 sm:$0xff]   ;;  %v3120_v24 = vld [vmem:[#allocation4 + $0x34] ss:$8 sps:$4 sm:$0xff]  }
  0xc3   :  { %1554 = vmatprep.subr.bf16.mxu1 %v3028_v25  ;;  %v3118_v25 = vld [vmem:[#allocation4 + $0x30] ss:$8 sps:$4 sm:$0xff]  }
  0xc5   :  { %1393 = vmatpush1.bf16.msra.mxu0 %v3023_v26  ;;  %v3123_v26 = vld [vmem:[#allocation4 + $0x44] ss:$8 sps:$4 sm:$0xff]  }
  0xc6   :  { %1555 = vmatpush1.bf16.msra.mxu1 %v3026_v27  ;;  %1394 = vmatprep.subr.bf16.mxu0 %v3031_v28  ;;  %v3121_v27 = vld [vmem:[#allocation4 + $0x40] ss:$8 sps:$4 sm:$0xff]   ;;  %v3126_v28 = vld [vmem:[#allocation4 + $0x54] ss:$8 sps:$4 sm:$0xff]  }
  0xc7   :  { %1556 = vmatprep.subr.bf16.mxu1 %v3034_v29  ;;  %v3229_v29 = vld [vmem:[%s3518_s0 + $0x18] ss:$0 sps:$4 sm:$0xff]  }
  0xc9   :  { %1395 = vmatpush1.bf16.msra.mxu0 %v3029_v30  ;;  %v3129_v30 = vld [vmem:[#allocation4 + $0x64] ss:$8 sps:$4 sm:$0xff]  }
  0xca   :  { %1557 = vmatpush1.bf16.msra.mxu1 %v3032_v31  ;;  %1396 = vmatprep.subr.bf16.mxu0 %v3037_v32  ;;  %v3127_v31 = vld [vmem:[#allocation4 + $0x60] ss:$8 sps:$4 sm:$0xff]  }
  0xcb   :  { %1558 = vmatprep.subr.bf16.mxu1 %v3040_v33  ;;  %v3132_v33 = vld [vmem:[#allocation4 + $0x74] ss:$8 sps:$4 sm:$0xff]  }
  0xcd   :  { %1397 = vmatpush1.bf16.msra.mxu0 %v3035_v34 }
  0xce   :  { %1559 = vmatpush1.bf16.msra.mxu1 %v3038_v35  ;;  %1398 = vmatprep.subr.bf16.mxu0 %v3043_v36 }
  0xcf   :  { %1560 = vmatprep.subr.bf16.mxu1 %v3046_v37  ;;  %v3130_v37 = vld [vmem:[#allocation4 + $0x70] ss:$8 sps:$4 sm:$0xff]  }
  0xd1   :  { %1399 = vmatpush1.bf16.msra.mxu0 %v3041_v38  ;;  %v3135_v38 = vld [vmem:[#allocation4 + $0x84] ss:$8 sps:$4 sm:$0xff]  }
  0xd2   :  { %1561 = vmatpush1.bf16.msra.mxu1 %v3044_v39  ;;  %1400 = vmatprep.subr.bf16.mxu0 %v3049_v40  ;;  %v3133_v39 = vld [vmem:[#allocation4 + $0x80] ss:$8 sps:$4 sm:$0xff]   ;;  %v3138_v40 = vld [vmem:[#allocation4 + $0x94] ss:$8 sps:$4 sm:$0xff]  }
  0xd3   :  { %1562 = vmatprep.subr.bf16.mxu1 %v3052_v41  ;;  %v3136_v41 = vld [vmem:[#allocation4 + $0x90] ss:$8 sps:$4 sm:$0xff]  }
  0xd5   :  { %1401 = vmatpush1.bf16.msra.mxu0 %v3047_v42  ;;  %v3141_v42 = vld [vmem:[#allocation4 + $0xa4] ss:$8 sps:$4 sm:$0xff]  }
  0xd6   :  { %1563 = vmatpush1.bf16.msra.mxu1 %v3050_v43  ;;  %1402 = vmatprep.subr.bf16.mxu0 %v3055_v44  ;;  %v3139_v43 = vld [vmem:[#allocation4 + $0xa0] ss:$8 sps:$4 sm:$0xff]   ;;  %v3144_v44 = vld [vmem:[#allocation4 + $0xb4] ss:$8 sps:$4 sm:$0xff]  }
  0xd7   :  { %1564 = vmatprep.subr.bf16.mxu1 %v3058_v45  ;;  %v3142_v45 = vld [vmem:[#allocation4 + $0xb0] ss:$8 sps:$4 sm:$0xff]  }
  0xd9   :  { %1403 = vmatpush1.bf16.msra.mxu0 %v3053_v46  ;;  %v3147_v46 = vld [vmem:[#allocation4 + $0xc4] ss:$8 sps:$4 sm:$0xff]  }
  0xda   :  { %1565 = vmatpush1.bf16.msra.mxu1 %v3056_v47  ;;  %1404 = vmatprep.subr.bf16.mxu0 %v3061_v48  ;;  %v3145_v47 = vld [vmem:[#allocation4 + $0xc0] ss:$8 sps:$4 sm:$0xff]   ;;  %v3150_v48 = vld [vmem:[#allocation4 + $0xd4] ss:$8 sps:$4 sm:$0xff]  }
  0xdb   :  { %1566 = vmatprep.subr.bf16.mxu1 %v3064_v49  ;;  %v3148_v49 = vld [vmem:[#allocation4 + $0xd0] ss:$8 sps:$4 sm:$0xff]  }
  0xdd   :  { %1405 = vmatpush1.bf16.msra.mxu0 %v3059_v50  ;;  %v3153_v50 = vld [vmem:[#allocation4 + $0xe4] ss:$8 sps:$4 sm:$0xff]  }
  0xde   :  { %1567 = vmatpush1.bf16.msra.mxu1 %v3062_v51  ;;  %1406 = vmatprep.subr.bf16.mxu0 %v3067_v52  ;;  %v3151_v51 = vld [vmem:[#allocation4 + $0xe0] ss:$8 sps:$4 sm:$0xff]   ;;  %v3156_v52 = vld [vmem:[#allocation4 + $0xf4] ss:$8 sps:$4 sm:$0xff]  }
  0xdf   :  { %1568 = vmatprep.subr.bf16.mxu1 %v3070_v53  ;;  %v3154_v53 = vld [vmem:[#allocation4 + $0xf0] ss:$8 sps:$4 sm:$0xff]  }
  0xe1   :  { %1407 = vmatpush1.bf16.msra.mxu0 %v3065_v54  ;;  %v3159_v54 = vld [vmem:[#allocation4 + $0x104] ss:$8 sps:$4 sm:$0xff]  }
  0xe2   :  { %1569 = vmatpush1.bf16.msra.mxu1 %v3068_v55  ;;  %1408 = vmatprep.subr.bf16.mxu0 %v3073_v56  ;;  %v3205_v55 = vld [vmem:[%s3523_s5 + $0x40] sm:$0xff]  }
  0xe3   :  { %1570 = vmatprep.subr.bf16.mxu1 %v3076_v57  ;;  %v3206_v56 = vld [vmem:[%s3523_s5] sm:$0xff]   ;;  %v3207_v57 = vld [vmem:[%s3523_s5 + $0x48] sm:$0xff]  }
  0xe5   :  { %1409 = vmatpush1.bf16.msra.mxu0 %v3071_v58  ;;  %v3208_v58 = vld [vmem:[%s3523_s5 + $0x8] sm:$0xff]  }
  0xe6   :  { %1571 = vmatpush1.bf16.msra.mxu1 %v3074_v59  ;;  %1410 = vmatprep.subr.bf16.mxu0 %v3079_v60  ;;  %v3209_v59 = vld [vmem:[%s3523_s5 + $0x50] sm:$0xff]  }
  0xe7   :  { %1572 = vmatprep.subr.bf16.mxu1 %v3082_v61  ;;  %v3210_v60 = vld [vmem:[%s3523_s5 + $0x10] sm:$0xff]   ;;  %v3211_v61 = vld [vmem:[%s3523_s5 + $0x58] sm:$0xff]  }
  0xe9   :  { %1411 = vmatpush1.bf16.msra.mxu0 %v3077_v62  ;;  %v3212_v62 = vld [vmem:[%s3523_s5 + $0x18] sm:$0xff]  }
  0xea   :  { %1573 = vmatpush1.bf16.msra.mxu1 %v3080_v63  ;;  %1412 = vmatprep.subr.bf16.mxu0 %v3085_v1  ;;  %v3213_v63 = vld [vmem:[%s3523_s5 + $0x60] sm:$0xff]  }
  0xeb   :  { %1574 = vmatprep.subr.bf16.mxu1 %v3088_v2  ;;  %v3214_v1 = vld [vmem:[%s3523_s5 + $0x20] sm:$0xff]   ;;  %v3215_v2 = vld [vmem:[%s3523_s5 + $0x68] sm:$0xff]  }
  0xed   :  { %1413 = vmatpush1.bf16.msra.mxu0 %v3083_v3  ;;  %v3216_v3 = vld [vmem:[%s3523_s5 + $0x28] sm:$0xff]  }
  0xee   :  { %1575 = vmatpush1.bf16.msra.mxu1 %v3086_v4  ;;  %1414 = vmatprep.subr.bf16.mxu0 %v3091_v5  ;;  %v276_v4 = vlaneseq }
  0xef   :  { %1576 = vmatprep.subr.bf16.mxu1 %v3094_v6 }
  0xf0   :  { %v3469_v5 = vshrl.u32 %v276_v4, 7  ;;  %v3217_v4 = vld [vmem:[%s3523_s5 + $0x70] sm:$0xff]  }
  0xf1   :  { %1415 = vmatpush1.bf16.msra.mxu0 %v3089_v7  ;;  %v3475_v7 = vld [vmem:[%s3520_s2] sm:$0xf] }
  0xf2   :  { %1577 = vmatpush1.bf16.msra.mxu1 %v3092_v8  ;;  %1416 = vmatprep.subr.bf16.mxu0 %v3097_v9  ;;  %v278_v6 = vsub.s32 0, %v3469_v5  ;;  %v282_v8 = vsub.s32 1, %v3469_v5 }
  0xf3   :  { %1578 = vmatprep.subr.bf16.mxu1 %v3100_v10 }
  0xf4   :  { %v279_v9 = vrot.slane %v3475_v7, %v278_v6  ;;  %v283_v10 = vrot.slane %v3475_v7, %v282_v8 }
  0xf5   :  { %1417 = vmatpush1.bf16.msra.mxu0 %v3095_v11 }
  0xf6   :  { %1579 = vmatpush1.bf16.msra.mxu1 %v3098_v12  ;;  %2036 = vmatprep.subr.bf16.mxu0 %v3111_v14 }
  0xf7   :  { %1580 = vmatprep.subr.bf16.mxu1 %v3105_v13 }
  0xf8   :  { %1419 = vmatmul.mubr.bf16.vlgmr.msra.gmra.mrb[0].mxu0 %v2422_v15 }
  0xf9   :  { %2037 = vmatpush1.bf16.msra.mxu0 %v3109_v18 }
  0xfa   :  { %1581 = vmatpush1.bf16.msra.mxu1 %v3103_v17  ;;  %2038 = vmatprep.subr.bf16.mxu0 %v3114_v20 }
  0xfb   :  { %1591 = vmatprep.subr.bf16.mxu1 %v3108_v19 }
  0xfd   :  { %1583 = vmatmul.mubr.bf16.vlgmr.msra.gmra.mrb[4].mxu1 %v2422_v15  ;;  %2039 = vmatpush1.bf16.msra.mxu0 %v3112_v22 }
  0xfe   :  { %1592 = vmatpush1.bf16.msra.mxu1 %v3106_v21  ;;  %1623 = vmatprep.mubr.bf16.mxu1 %v3309_v0  ;;  %v3124_v0 = vld [vmem:[#allocation4 + $0x50] ss:$8 sps:$4 sm:$0xff]  }
  0xff   :  { %2040 = vmatprep.subr.bf16.mxu0 %v3117_v23  ;;  %2713 = vmatprep.subr.bf16.mxu1 %v3205_v55  ;;  %v3157_v23 = vld [vmem:[#allocation4 + $0x100] ss:$8 sps:$4 sm:$0xff]  }
 0x100   :  { %v3193_v55 = vld [vmem:[#allocation4 + $0x1c0] ss:$8 sps:$4 sm:$0xff]  }
 0x101   :  { %2041 = vmatpush1.bf16.msra.mxu0 %v3115_v16 }
 0x102   :  { %2042 = vmatprep.subr.bf16.mxu0 %v3120_v24  ;;  %v3162_v24 = vld [vmem:[#allocation4 + $0x114] ss:$8 sps:$4 sm:$0xff]  }
 0x105   :  { %2043 = vmatpush1.bf16.msra.mxu0 %v3118_v25  ;;  %v290_v25 = vsub.s32 3, %v3469_v5 }
 0x106   :  { %2044 = vmatprep.subr.bf16.mxu0 %v3123_v26  ;;  %v3160_v26 = vld [vmem:[#allocation4 + $0x110] ss:$8 sps:$4 sm:$0xff]  }
 0x109   :  { %2622 = vmatmul.mubr.msk.bf16.vlgmr.msra.gmra.mrb[4].mxu1 %vm1300_vm0, %v3229_v29  ;;  %2045 = vmatpush1.bf16.msra.mxu0 %v3121_v27  ;;  %v3165_v27 = vld [vmem:[#allocation4 + $0x124] ss:$8 sps:$4 sm:$0xff]  }
 0x10a   :  { %2046 = vmatprep.subr.bf16.mxu0 %v3126_v28  ;;  %2714 = vmatpush3.bf16.msra.mxu1 %v3206_v56  ;;  %v291_v28 = vrot.slane %v3475_v7, %v290_v25  ;;  %v286_v56 = vsub.s32 2, %v3469_v5  ;;  %v3224_v5 = vld [vmem:[#allocation6 + $0x18] sm:$0xff]  }
 0x10b   :  { %2715 = vmatprep.subr.bf16.mxu1 %v3207_v57  ;;  %v3198_v57 = vld [vmem:[#allocation4 + $0x1d4] ss:$8 sps:$4 sm:$0xff]  }
 0x10d   :  { %2047 = vmatpush1.bf16.msra.mxu0 %v3124_v0  ;;  %v3163_v0 = vld [vmem:[#allocation4 + $0x120] ss:$8 sps:$4 sm:$0xff]  }
 0x10e   :  { %2048 = vmatprep.subr.bf16.mxu0 %v3129_v30  ;;  %2716 = vmatpush3.bf16.msra.mxu1 %v3208_v58  ;;  %v3196_v58 = vld [vmem:[#allocation4 + $0x1d0] ss:$8 sps:$4 sm:$0xff]  }
 0x10f   :  { %2717 = vmatprep.subr.bf16.mxu1 %v3209_v59  ;;  %v287_v59 = vrot.slane %v3475_v7, %v286_v56  ;;  %v3218_v7 = vld [vmem:[%s3523_s5 + $0x30] sm:$0xff]  }
 0x110   :  { %v3429_v32 = vpop.f32.mrb[0].mxu1 }
 0x111   :  { %v3431_v34 = vpop.f32.mrb[1].mxu1  ;;  %2049 = vmatpush1.bf16.msra.mxu0 %v3127_v31  ;;  %v3168_v31 = vld [vmem:[#allocation4 + $0x134] ss:$8 sps:$4 sm:$0xff]  }
 0x112   :  { %v1465_v35 = vpop.f32.mrb[2].mxu1  ;;  %2050 = vmatprep.subr.bf16.mxu0 %v3132_v33  ;;  %2718 = vmatpush3.bf16.msra.mxu1 %v3210_v60  ;;  %v3201_v60 = vld [vmem:[#allocation4 + $0x1e4] ss:$8 sps:$4 sm:$0xff]  }
 0x113   :  { %v1466_v36 = vpop.f32.mrb[3].mxu1  ;;  %2719 = vmatprep.subr.bf16.mxu1 %v3211_v61  ;;  %v3199_v61 = vld [vmem:[#allocation4 + $0x1e0] ss:$8 sps:$4 sm:$0xff]  }
 0x114   :  { %v3166_v36 = vld [vmem:[#allocation4 + $0x130] ss:$8 sps:$4 sm:$0xff]  }
 0x115   :  { %2051 = vmatpush1.bf16.msra.mxu0 %v3130_v37  ;;  %v3171_v37 = vld [vmem:[#allocation4 + $0x144] ss:$8 sps:$4 sm:$0xff]  }
 0x116   :  { %2052 = vmatprep.subr.bf16.mxu0 %v3135_v38  ;;  %2720 = vmatpush3.bf16.msra.mxu1 %v3212_v62 }
 0x117   :  { %2721 = vmatprep.subr.bf16.mxu1 %v3213_v63  ;;  %v3204_v63 = vld [vmem:[#allocation4 + $0x1f4] ss:$8 sps:$4 sm:$0xff]  }
 0x119   :  { %2053 = vmatpush1.bf16.msra.mxu0 %v3133_v39  ;;  %v3169_v39 = vld [vmem:[#allocation4 + $0x140] ss:$8 sps:$4 sm:$0xff]  }
 0x11a   :  { %2054 = vmatprep.subr.bf16.mxu0 %v3138_v40  ;;  %2722 = vmatpush3.bf16.msra.mxu1 %v3214_v1  ;;  %v3174_v40 = vld [vmem:[#allocation4 + $0x154] ss:$8 sps:$4 sm:$0xff]   ;;  %v3202_v1 = vld [vmem:[#allocation4 + $0x1f0] ss:$8 sps:$4 sm:$0xff]  }
 0x11b   :  { %2723 = vmatprep.subr.bf16.mxu1 %v3215_v2 }
 0x11d   :  { %2055 = vmatpush1.bf16.msra.mxu0 %v3136_v41  ;;  %v3172_v41 = vld [vmem:[#allocation4 + $0x150] ss:$8 sps:$4 sm:$0xff]  }
 0x11e   :  { %2056 = vmatprep.subr.bf16.mxu0 %v3141_v42  ;;  %2724 = vmatpush3.bf16.msra.mxu1 %v3216_v3  ;;  %v3177_v42 = vld [vmem:[#allocation4 + $0x164] ss:$8 sps:$4 sm:$0xff]  }
 0x11f   :  { %2725 = vmatprep.subr.bf16.mxu1 %v3217_v4 }
 0x121   :  { %2057 = vmatpush1.bf16.msra.mxu0 %v3139_v43  ;;  %v3175_v43 = vld [vmem:[#allocation4 + $0x160] ss:$8 sps:$4 sm:$0xff]  }
 0x122   :  { %2058 = vmatprep.subr.bf16.mxu0 %v3144_v44  ;;  %v3180_v44 = vld [vmem:[#allocation4 + $0x174] ss:$8 sps:$4 sm:$0xff]   ;;  %2726 = vmatpush3.bf16.msra.mxu1 %v3218_v7 }
 0x125   :  { %2059 = vmatpush1.bf16.msra.mxu0 %v3142_v45  ;;  %v3178_v45 = vld [vmem:[#allocation4 + $0x170] ss:$8 sps:$4 sm:$0xff]  }
 0x126   :  { %2060 = vmatprep.subr.bf16.mxu0 %v3147_v46  ;;  %v3183_v46 = vld [vmem:[#allocation4 + $0x184] ss:$8 sps:$4 sm:$0xff]  }
 0x129   :  { %2061 = vmatpush1.bf16.msra.mxu0 %v3145_v47  ;;  %v3181_v47 = vld [vmem:[#allocation4 + $0x180] ss:$8 sps:$4 sm:$0xff]  }
 0x12a   :  { %2062 = vmatprep.subr.bf16.mxu0 %v3150_v48  ;;  %v3186_v48 = vld [vmem:[#allocation4 + $0x194] ss:$8 sps:$4 sm:$0xff]  }
 0x12d   :  { %2063 = vmatpush1.bf16.msra.mxu0 %v3148_v49  ;;  %v3184_v49 = vld [vmem:[#allocation4 + $0x190] ss:$8 sps:$4 sm:$0xff]  }
 0x12e   :  { %2064 = vmatprep.subr.bf16.mxu0 %v3153_v50  ;;  %v3189_v50 = vld [vmem:[#allocation4 + $0x1a4] ss:$8 sps:$4 sm:$0xff]  }
 0x131   :  { %2065 = vmatpush1.bf16.msra.mxu0 %v3151_v51  ;;  %v3187_v51 = vld [vmem:[#allocation4 + $0x1a0] ss:$8 sps:$4 sm:$0xff]  }
 0x132   :  { %2066 = vmatprep.subr.bf16.mxu0 %v3156_v52  ;;  %v3192_v52 = vld [vmem:[#allocation4 + $0x1b4] ss:$8 sps:$4 sm:$0xff]  }
 0x135   :  { %2067 = vmatpush1.bf16.msra.mxu0 %v3154_v53  ;;  %v3190_v53 = vld [vmem:[#allocation4 + $0x1b0] ss:$8 sps:$4 sm:$0xff]  }
 0x136   :  { %2077 = vmatprep.subr.bf16.mxu0 %v3159_v54  ;;  %v3195_v54 = vld [vmem:[#allocation4 + $0x1c4] ss:$8 sps:$4 sm:$0xff]  }
 0x1cb   :  { %v1420_v11 = vpop.f32.mrb[0].mxu0 }
 0x1cc   :  { %v2764_v12 = vadd.f32 %v1420_v11, %v279_v9  ;;  %v1422_v13 = vpop.f32.mrb[1].mxu0  ;;  %v3219_v9 = vld [vmem:[%s3523_s5 + $0x78] sm:$0xff]   ;;  %v3310_v11 = vmov 0.0  }
 0x1cd   :  { %v2766_v14 = vadd.f32 %v1422_v13, %v283_v10  ;;  %v1424_v15 = vpop.f32.mrb[2].mxu0  ;;  %v3220_v10 = vld [vmem:[%s3523_s5 + $0x38] sm:$0xff]   ;;  %2727 = vmatprep.subr.bf16.mxu1 %v3219_v9 }
 0x1ce   :  { %v2765_v17 = vadd.f32 %v2764_v12, %v3429_v32  ;;  %v1425_v18 = vpop.f32.mrb[3].mxu0  ;;  %2728 = vmatpush3.bf16.msra.mxu1 %v3220_v10  ;;  %v1704_v12 = vld [vmem:[%s3522_s4] sm:$0x3] }
 0x1cf   :  { %v2767_v19 = vadd.f32 %v2766_v14, %v3431_v34  ;;  %2744 = vmatprep.subr.bf16.mxu1 %v3310_v11  ;;  %v1709_v13 = vrot.slane %v1704_v12, %v278_v6  ;;  %v1713_v14 = vrot.slane %v1704_v12, %v282_v8  ;;  %v3223_v6 = vld [vmem:[#allocation6 + $0x10] sm:$0xff]   ;;  %v3225_v8 = vld [vmem:[#allocation6 + $0x20] sm:$0xff]  }
 0x1d0   :  { %v1632_v20 = vmax.f32 %v2765_v17, 0.0 }
 0x1d1   :  { %v1633_v21 = vmax.f32 %v2767_v19, 0.0 }
 0x1d2   :  { %v1636_v16 = vpack.c.bf16 %v1632_v20, %v1632_v20 }
 0x1d3   :  { %v1637_v22 = vpack.c.bf16 %v1633_v21, %v1633_v21 }
 0x1d5   :  { %2068 = vmatprep.mubr.bf16.mxu0 %v1637_v22 }
 0x1d6   :  { %2069 = vmatmul.mubr.bf16.vlgmr.msra.gmra.mrb[4].mxu0 %v1636_v16 }
 0x1d7   :  { %2078 = vmatpush1.bf16.msra.mxu0 %v3157_v23 }
 0x1d8   :  { %2079 = vmatprep.subr.bf16.mxu0 %v3162_v24  ;;  %v3221_v24 = vld [vmem:[#allocation6] sm:$0xff]  }
 0x1db   :  { %2080 = vmatpush1.bf16.msra.mxu0 %v3160_v26  ;;  %v3222_v26 = vld [vmem:[#allocation6 + $0x8] sm:$0xff]  }
 0x1dc   :  { %v1625_v29 = vpop.f32.mrb[4].mxu1  ;;  %2081 = vmatprep.subr.bf16.mxu0 %v3165_v27  ;;  %v3226_v27 = vld [vmem:[#allocation6 + $0x28] sm:$0xff]  }
 0x1dd   :  { %v1627_v30 = vpop.f32.mrb[5].mxu1  ;;  %v2768_v62 = vadd.f32 %v1625_v29, %v287_v59  ;;  %v3228_v29 = vld [vmem:[#allocation6 + $0x38] sm:$0xff]  }
 0x1de   :  { %v2769_v32 = vadd.f32 %v1627_v30, %v291_v28  ;;  %v1629_v33 = vpop.f32.mrb[6].mxu1  ;;  %v3227_v28 = vld [vmem:[#allocation6 + $0x30] sm:$0xff]   ;;  %v2687_v30 = vld [vmem:[%s3524_s6] ss:$0 sm:$0xff] }
 0x1df   :  { %v1630_v34 = vpop.f32.mrb[7].mxu1  ;;  %2082 = vmatpush1.bf16.msra.mxu0 %v3163_v0  ;;  %v1634_v2 = vmax.f32 %v2768_v62, 0.0 }
 0x1e0   :  { %v1635_v35 = vmax.f32 %v2769_v32, 0.0  ;;  %2083 = vmatprep.subr.bf16.mxu0 %v3168_v31 }
 0x1e1   :  { %v1638_v3 = vpack.c.bf16 %v1634_v2, %v1634_v2 }
 0x1e2   :  { %v1639_v38 = vpack.c.bf16 %v1635_v35, %v1635_v35 }
 0x1e3   :  { %2084 = vmatpush1.bf16.msra.mxu0 %v3166_v36 }
 0x1e4   :  { %2109 = vmatprep.mubr.bf16.mxu0 %v1639_v38  ;;  %2085 = vmatprep.subr.bf16.mxu0 %v3171_v37  ;;  %v2704_v38 = vld [vmem:[%s3526_s8] ss:$0 sm:$0xff] }
 0x1e7   :  { %2086 = vmatpush1.bf16.msra.mxu0 %v3169_v39 }
 0x1e8   :  { %2087 = vmatprep.subr.bf16.mxu0 %v3174_v40 }
 0x1eb   :  { %2088 = vmatpush1.bf16.msra.mxu0 %v3172_v41 }
 0x1ec   :  { %2089 = vmatprep.subr.bf16.mxu0 %v3177_v42 }
 0x1ef   :  { %2090 = vmatpush1.bf16.msra.mxu0 %v3175_v43 }
 0x1f0   :  { %2091 = vmatprep.subr.bf16.mxu0 %v3180_v44 }
 0x1f3   :  { %2092 = vmatpush1.bf16.msra.mxu0 %v3178_v45 }
 0x1f4   :  { %2093 = vmatprep.subr.bf16.mxu0 %v3183_v46 }
 0x1f7   :  { %2094 = vmatpush1.bf16.msra.mxu0 %v3181_v47 }
 0x1f8   :  { %2095 = vmatprep.subr.bf16.mxu0 %v3186_v48 }
 0x1fb   :  { %2096 = vmatpush1.bf16.msra.mxu0 %v3184_v49 }
 0x1fc   :  { %2097 = vmatprep.subr.bf16.mxu0 %v3189_v50 }
 0x1ff   :  { %2098 = vmatpush1.bf16.msra.mxu0 %v3187_v51 }
 0x200   :  { %2099 = vmatprep.subr.bf16.mxu0 %v3192_v52 }
 0x203   :  { %2100 = vmatpush1.bf16.msra.mxu0 %v3190_v53 }
 0x204   :  { %2101 = vmatprep.subr.bf16.mxu0 %v3195_v54 }
 0x207   :  { %2102 = vmatpush1.bf16.msra.mxu0 %v3193_v55 }
 0x208   :  { %2103 = vmatprep.subr.bf16.mxu0 %v3198_v57 }
 0x20b   :  { %2104 = vmatpush1.bf16.msra.mxu0 %v3196_v58 }
 0x20c   :  { %2105 = vmatprep.subr.bf16.mxu0 %v3201_v60 }
 0x20f   :  { %2106 = vmatpush1.bf16.msra.mxu0 %v3199_v61 }
 0x210   :  { %2107 = vmatprep.subr.bf16.mxu0 %v3204_v63 }
 0x213   :  { %2108 = vmatpush1.bf16.msra.mxu0 %v3202_v1 }
 0x216   :  { %2110 = vmatmul.mubr.bf16.vlgmr.msra.gmra.mrb[4].mxu0 %v1638_v3 }
 0x2e9   :  { %v2111_v15 = vpop.f32.mrb[4].mxu0 }
 0x2ea   :  { %v2770_v17 = vadd.f32 %v2111_v15, %v1709_v13  ;;  %v2113_v18 = vpop.f32.mrb[5].mxu0 }
 0x2eb   :  { %v2771_v19 = vadd.f32 %v2113_v18, %v1713_v14  ;;  %v2115_v20 = vpop.f32.mrb[6].mxu0 }
 0x2ec   :  { %v2118_v21 = vmax.f32 %v2770_v17, 0.0  ;;  %v2116_v22 = vpop.f32.mrb[7].mxu0 }
 0x2ed   :  { %v2119_v23 = vmax.f32 %v2771_v19, 0.0 }
 0x2ee   :  { %v2120_v25 = vpack.c.bf16 %v2118_v21, %v2118_v21 }
 0x2ef   :  { %v2121_v16 = vpack.c.bf16 %v2119_v23, %v2119_v23 }
 0x2f1   :  { %2289 = vmatprep.mubr.bf16.mxu1 %v2121_v16 }
 0x2f2   :  { %2290 = vmatmul.mubr.bf16.vlgmr.msra.gmra.mrb[8].mxu1 %v2120_v25 }
 0x2f3   :  { %2745 = vmatpush3.bf16.msra.mxu1 %v3221_v24  ;;  %2760 = vmatprep.mubr.msk.bf16.mxu1 %vm3311_vm1, %v3310_v11 }
 0x2f4   :  { %2746 = vmatprep.subr.bf16.mxu1 %v3310_v11 }
 0x2f7   :  { %2747 = vmatpush3.bf16.msra.mxu1 %v3222_v26 }
 0x2f8   :  { %2748 = vmatprep.subr.bf16.mxu1 %v3310_v11 }
 0x2fb   :  { %2749 = vmatpush3.bf16.msra.mxu1 %v3223_v6 }
 0x2fc   :  { %2750 = vmatprep.subr.bf16.mxu1 %v3310_v11 }
 0x2ff   :  { %2751 = vmatpush3.bf16.msra.mxu1 %v3224_v5 }
 0x300   :  { %2752 = vmatprep.subr.bf16.mxu1 %v3310_v11 }
 0x303   :  { %2753 = vmatpush3.bf16.msra.mxu1 %v3225_v8 }
 0x304   :  { %2754 = vmatprep.subr.bf16.mxu1 %v3310_v11 }
 0x307   :  { %2755 = vmatpush3.bf16.msra.mxu1 %v3226_v27 }
 0x308   :  { %2756 = vmatprep.subr.bf16.mxu1 %v3310_v11 }
 0x30b   :  { %2757 = vmatpush3.bf16.msra.mxu1 %v3227_v28 }
 0x30c   :  { %2758 = vmatprep.subr.bf16.mxu1 %v3310_v11 }
 0x30f   :  { %2759 = vmatpush3.bf16.msra.mxu1 %v3228_v29 }
 0x3c5   :  { %v2729_v0 = vpop.f32.mrb[8].mxu1 }
 0x3c6   :  { %v2730_v31 = vpop.f32.mrb[9].mxu1 }
 0x3c7   :  { %v2731_v32 = vadd.f32 %v2730_v31, %v2729_v0  ;;  %v2732_v33 = vpop.f32.mrb[10].mxu1 }
 0x3c8   :  { %v2733_v34 = vpop.f32.mrb[11].mxu1 }
 0x3c9   :  { %v2292_v35 = vadd.f32 %v2731_v32, %v2687_v30 }
 0x3cb   :  { %v2297_v36 = vmax.f32 %v2292_v35, 0.0 }
 0x3cd   :  { %v2298_v37 = vpack.c.bf16 %v2297_v36, %v2297_v36 }
 0x3cf   :  { %2761 = vmatmul.mubr.bf16.vlgmr.msra.gmra.mrb[12].mxu1 %v2298_v37 }
 0x4a2   :  { %v2404_v39 = vpop.f32.mrb[12].mxu1 }
 0x4a3   :  { %v2405_v40 = vadd.f32 %v2704_v38, %v2404_v39  ;;  %v2762_v41 = vpop.f32.mrb[13].mxu1 }
 0x4a4   :  { %v2407_v42 = vpop.f32.mrb[14].mxu1 }
 0x4a5   :  { %v2410_v43 = vpack.c.bf16 %v2405_v40, %v2405_v40  ;;  %v2763_v44 = vpop.f32.mrb[15].mxu1 }
 0x4a7   :  { %2411 = vst [vmem:[%s3527_s9] sm:$0xf] %v2410_v43 }
 0x4a8   :  { %2416 = vsyncpa [#allocation3], 1 }
 0x4a9   :  { %2417 = vsyncpa [#allocation5], 1 }

</bundles_post_ra>
